<compile_context>
chip_gen: v7x
topology: tpu7x:2x2x1
jax: 0.10.0
libtpu: 0.0.40
codegen_flags: <defaults>
</compile_context>

<pallas_src>
import functools

import jax
import jax.numpy as jnp
import numpy as np
from jax.experimental import pallas as pl
from jax.experimental.pallas import tpu as pltpu

EPS = 1e-5
DIL = 2  # dilate_rate


# ------------------------------ fused Pallas kernel ------------------------------


def _module_kernel(x_ref, w1_ref, b1_ref, w2_ref, b2_ref, w3_ref, b3_ref,
                   ws_ref, bs_ref, mask_ref, o_ref, pad_ref,
                   *, L, W, dil, pad, fuse_k):
    """Whole 3-block module for one grid step.

    x_ref/o_ref : (C, L) channel-major activations (L = H*W, or N*H*W when batch-folded).
    w1/w3       : (3, C, C) bf16        b*: (3, C, 1) f32
    w2          : fuse_k -> (3, C, 9C) bf16 (tap-major);  else (3, 9, C, C) bf16
    ws/bs       : (C, C) bf16 / (C, 1) f32  projection shortcut (block 0 only)
    mask        : (9, L) f32 per-tap validity mask (handles image borders + batch folding)
    pad_ref     : (C, pad + L + pad) f32 zero-haloed flat buffer (VMEM scratch).
    """
    C = x_ref.shape[0]

    # Zero only the halo; the interior is fully overwritten every block. Kept per grid
    # step (with dimension_semantics=("parallel",) each core runs its own steps).
    pad_ref[:, :pad] = jnp.zeros((C, pad), jnp.float32)
    pad_ref[:, pad + L:pad + L + pad] = jnp.zeros((C, pad), jnp.float32)

    # Tap offsets in the flat buffer (t = ky*3 + kx), and hoisted mask rows.
    offs = [(ky - 1) * dil * W + (kx - 1) * dil for ky in range(3) for kx in range(3)]
    mvals = [None if t == 4 else mask_ref[t:t + 1, :] for t in range(9)]

    a = x_ref[...].astype(jnp.float32)                                   # (C, L)

    for blk in range(3):
        a_bf = a.astype(jnp.bfloat16)                                    # bf16 MXU operand

        # ---- shortcut --------------------------------------------------------
        if blk == 0:   # conv1x1 + BN projection
            s = jnp.dot(ws_ref[...], a_bf, preferred_element_type=jnp.float32) + bs_ref[...]
        else:          # identity
            s = a

        # ---- conv1x1 + BN + ReLU ---------------------------------------------
        y = jnp.maximum(
            jnp.dot(w1_ref[blk], a_bf, preferred_element_type=jnp.float32) + b1_ref[blk],
            0.0)

        # ---- 3x3 dilated conv + BN + ReLU --------------------------------------
        pad_ref[:, pad:pad + L] = y                                      # lane-aligned write
        if fuse_k:
            # Small C: fuse the 9 taps into one K=9C contraction to fill the MXU.
            taps = []
            for t, off in enumerate(offs):
                if t == 4:
                    taps.append(y)                                       # centre tap reuse
                else:
                    taps.append(pad_ref[:, pad + off:pad + off + L] * mvals[t])
            tmat = jnp.concatenate(taps, axis=0).astype(jnp.bfloat16)    # (9C, L) bf16
            acc = jnp.dot(w2_ref[blk], tmat, preferred_element_type=jnp.float32)
        else:
            # Large C: accumulate 9 (C,C)@(C,L) dots; no (9C,L) intermediate.
            acc = jnp.dot(w2_ref[blk, 4], y.astype(jnp.bfloat16),
                          preferred_element_type=jnp.float32)
            for t, off in enumerate(offs):
                if t == 4:
                    continue
                tap = pad_ref[:, pad + off:pad + off + L] * mvals[t]
                acc = acc + jnp.dot(w2_ref[blk, t], tap.astype(jnp.bfloat16),
                                    preferred_element_type=jnp.float32)
        y = jnp.maximum(acc + b2_ref[blk], 0.0)

        # ---- conv1x1 + BN + ReLU ---------------------------------------------
        y = jnp.maximum(
            jnp.dot(w3_ref[blk], y.astype(jnp.bfloat16),
                    preferred_element_type=jnp.float32) + b3_ref[blk],
            0.0)

        # ---- residual add + ReLU ---------------------------------------------
        a = jnp.maximum(y + s, 0.0)

    o_ref[...] = a.astype(o_ref.dtype)


# ------------------------------ wrapper ------------------------------


def pack_params(params, C, fuse_k):
    """Stack the 3 blocks' folded conv+BN params into kernel-ready tensors (bf16 weights)."""
    w1_all = jnp.stack([p["w1"][:, :, 0, 0] for p in params]).astype(jnp.bfloat16)   # (3,C,C)
    b1_all = jnp.stack([p["b1"].reshape(C, 1) for p in params])                       # (3,C,1)
    if fuse_k:
        # OIHW -> (O, ky, kx, I) -> (O, 9*I), matching tap order t = ky*3+kx.
        w2_all = jnp.stack([jnp.transpose(p["w2"], (0, 2, 3, 1)).reshape(C, 9 * C)
                            for p in params]).astype(jnp.bfloat16)                    # (3,C,9C)
    else:
        w2_all = jnp.stack([jnp.stack([p["w2"][:, :, ky, kx]
                                       for ky in range(3) for kx in range(3)], axis=0)
                            for p in params]).astype(jnp.bfloat16)                    # (3,9,C,C)
    b2_all = jnp.stack([p["b2"].reshape(C, 1) for p in params])
    w3_all = jnp.stack([p["w3"][:, :, 0, 0] for p in params]).astype(jnp.bfloat16)
    b3_all = jnp.stack([p["b3"].reshape(C, 1) for p in params])
    ws = params[0]["ws"][:, :, 0, 0].astype(jnp.bfloat16)
    bs = params[0]["bs"].reshape(C, 1)
    return w1_all, b1_all, w2_all, b2_all, w3_all, b3_all, ws, bs


def build_tap_masks(nimg, H, W, dil):
    """(9, nimg*H*W) f32 validity masks per tap (image borders + cross-image wrap)."""
    M = H * W
    L = nimg * M
    pos = np.arange(L) % M
    r, c = pos // W, pos % W
    masks = []
    for ky in range(3):
        for kx in range(3):
            dy, dx = (ky - 1) * dil, (kx - 1) * dil
            ok = (r + dy >= 0) & (r + dy < H) & (c + dx >= 0) & (c + dx < W)
            masks.append(ok.astype(np.float32))
    return jnp.asarray(np.stack(masks))


def dilated_det_module(x_nchw, params, dil=DIL, fold_batch=None):
    """Full module forward. x_nchw: (N, C, H, W) float32."""
    N, C, H, W = x_nchw.shape
    M = H * W
    assert C % 8 == 0, "C must be a multiple of the 8-sublane tile"
    assert M % 128 == 0, "H*W must be a multiple of 128 lanes"

    # Fold the batch into the lane axis for small problems (single grid step, wide
    # lane-dense stores); keep grid=(N,) for larger ones so v7x's 2 cores both work.
    if fold_batch is None:
        fold_batch = (C * N * M * 4) <= (8 << 20)
    nimg = N if fold_batch else 1
    steps = 1 if fold_batch else N
    L = nimg * M

    pad = ((dil * W + dil + 127) // 128) * 128       # halo >= dil*W+dil, lane-aligned interior
    fuse_k = C < 64                                  # small C: fuse taps into one K=9C dot

    w1a, b1a, w2a, b2a, w3a, b3a, ws, bs = pack_params(params, C, fuse_k)
    masks = build_tap_masks(nimg, H, W, dil)         # (9, L)

    if fold_batch:
        x_k = x_nchw.reshape(N, C, M).transpose(1, 0, 2).reshape(1, C, L)
    else:
        x_k = x_nchw.reshape(N, C, M)

    kernel = functools.partial(_module_kernel, L=L, W=W, dil=dil, pad=pad, fuse_k=fuse_k)

    w2_spec = (pl.BlockSpec((3, C, 9 * C), lambda n: (0, 0, 0)) if fuse_k
               else pl.BlockSpec((3, 9, C, C), lambda n: (0, 0, 0, 0)))

    # Explicit VMEM budget: resident weights + double-buffered I/O + scratch + temps.
    bytes_w = 34 * C * C * 2 + 40 * C
    bytes_io = 2 * 2 * C * L * 4
    bytes_scratch = C * (L + 2 * pad) * 4
    bytes_tmp = (9 * C * L * 6) if fuse_k else (6 * C * L * 4)
    vmem_limit = int(min(100 << 20,
                         max(32 << 20, 2 * (bytes_w + bytes_io + bytes_scratch + bytes_tmp))))

    out = pl.pallas_call(
        kernel,
        out_shape=jax.ShapeDtypeStruct((steps, C, L), x_nchw.dtype),
        grid=(steps,),
        in_specs=[
            pl.BlockSpec((None, C, L), lambda n: (n, 0, 0)),   # x
            pl.BlockSpec((3, C, C), lambda n: (0, 0, 0)),      # w1 (all blocks, bf16)
            pl.BlockSpec((3, C, 1), lambda n: (0, 0, 0)),      # b1
            w2_spec,                                           # w2 (bf16)
            pl.BlockSpec((3, C, 1), lambda n: (0, 0, 0)),      # b2
            pl.BlockSpec((3, C, C), lambda n: (0, 0, 0)),      # w3 (bf16)
            pl.BlockSpec((3, C, 1), lambda n: (0, 0, 0)),      # b3
            pl.BlockSpec((C, C), lambda n: (0, 0)),            # ws (projection, bf16)
            pl.BlockSpec((C, 1), lambda n: (0, 0)),            # bs
            pl.BlockSpec((9, L), lambda n: (0, 0)),            # tap masks
        ],
        out_specs=pl.BlockSpec((None, C, L), lambda n: (n, 0, 0)),
        scratch_shapes=[pltpu.VMEM((C, L + 2 * pad), jnp.float32)],
        compiler_params=pltpu.CompilerParams(
            dimension_semantics=("parallel",),
            vmem_limit_bytes=vmem_limit),
    )(x_k, w1a, b1a, w2a, b2a, w3a, b3a, ws, bs, masks)

    if fold_batch:
        return out.reshape(C, N, M).transpose(1, 0, 2).reshape(N, C, H, W)
    return out.reshape(N, C, H, W)


# ------------------------ parameters (deterministic, BN folded) ------------------------


def fold_conv_bn(key, cin, cout, ksize):
    """Deterministic Conv+BN params, folded into a single (OIHW weight, bias)."""
    ks = jax.random.split(key, 6)
    w = 0.2 * jax.random.normal(ks[0], (cout, cin, ksize, ksize), jnp.float32)  # OIHW
    bconv = 0.1 * jax.random.normal(ks[1], (cout,), jnp.float32)
    gamma = 1.0 + 0.1 * jax.random.normal(ks[2], (cout,), jnp.float32)
    beta = 0.1 * jax.random.normal(ks[3], (cout,), jnp.float32)
    rmean = 0.1 * jax.random.normal(ks[4], (cout,), jnp.float32)
    rvar = 1.0 + 0.1 * jnp.abs(jax.random.normal(ks[5], (cout,), jnp.float32))
    scale = gamma / jnp.sqrt(rvar + EPS)
    wf = w * scale[:, None, None, None]
    bf = (bconv - rmean) * scale + beta
    return wf, bf


def make_block_params(key, C, with_projection):
    keys = jax.random.split(key, 4 if with_projection else 3)
    w1, b1 = fold_conv_bn(keys[0], C, C, 1)
    w2, b2 = fold_conv_bn(keys[1], C, C, 3)
    w3, b3 = fold_conv_bn(keys[2], C, C, 1)
    p = {"w1": w1, "b1": b1, "w2": w2, "b2": b2, "w3": w3, "b3": b3}
    if with_projection:
        ws, bs = fold_conv_bn(keys[3], C, C, 1)
        p["ws"], p["bs"] = ws, bs
    return p


# ------------------------------ pure-JAX reference ------------------------------
# The reference casts conv inputs/weights to bf16 with f32 accumulation, matching the
# kernel's MXU precision, so the comparison tolerance can stay tight.


def _conv_ref(x, w_oihw, b, dil, pad):
    out = jax.lax.conv_general_dilated(
        x.astype(jnp.bfloat16), w_oihw.astype(jnp.bfloat16),
        window_strides=(1, 1), padding=((pad, pad), (pad, pad)),
        rhs_dilation=(dil, dil), dimension_numbers=("NCHW", "OIHW", "NCHW"),
        preferred_element_type=jnp.float32)
    return out + b.reshape(1, -1, 1, 1)


def block_ref(x, p, with_projection):
    y = jax.nn.relu(_conv_ref(x, p["w1"], p["b1"], 1, 0))
    y = jax.nn.relu(_conv_ref(y, p["w2"], p["b2"], DIL, DIL))
    y = jax.nn.relu(_conv_ref(y, p["w3"], p["b3"], 1, 0))
    s = _conv_ref(x, p["ws"], p["bs"], 1, 0) if with_projection else x
    return jax.nn.relu(y + s)


def module_ref(x, params):
    x = block_ref(x, params[0], True)
    x = block_ref(x, params[1], False)
    x = block_ref(x, params[2], False)
    return x


# ------------------------------------ main ------------------------------------


if __name__ == "__main__":
    key = jax.random.PRNGKey(0)
    N, C, H, W = 2, 8, 16, 16          # NCHW, as the PyTorch module takes
    kx, kp = jax.random.split(key)
    x_nchw = jax.random.normal(kx, (N, C, H, W), jnp.float32)

    pkeys = jax.random.split(kp, 3)
    params = [make_block_params(pkeys[0], C, True),
              make_block_params(pkeys[1], C, False),
              make_block_params(pkeys[2], C, False)]

    out = dilated_det_module(x_nchw, params)
    out = jax.block_until_ready(out)

    ref = module_ref(x_nchw, params)
    np.testing.assert_allclose(np.asarray(out), np.asarray(ref), rtol=5e-3, atol=5e-3)

    assert out.shape == (N, C, H, W)
    print("KERNEL_OK")
</pallas_src>

<mosaic_0001>
module attributes {stable_mosaic.version = 11 : i64} {
  func.func @_module_kernel(%arg0: i32, %arg1: memref<1x8x512xf32, #tpu.memory_space<vmem>>, %arg2: memref<3x8x8xbf16, #tpu.memory_space<vmem>>, %arg3: memref<3x8x1xf32, #tpu.memory_space<vmem>>, %arg4: memref<3x8x72xbf16, #tpu.memory_space<vmem>>, %arg5: memref<3x8x1xf32, #tpu.memory_space<vmem>>, %arg6: memref<3x8x8xbf16, #tpu.memory_space<vmem>>, %arg7: memref<3x8x1xf32, #tpu.memory_space<vmem>>, %arg8: memref<8x8xbf16, #tpu.memory_space<vmem>>, %arg9: memref<8x1xf32, #tpu.memory_space<vmem>>, %arg10: memref<9x512xf32, #tpu.memory_space<vmem>>, %arg11: memref<1x8x512xf32, #tpu.memory_space<vmem>>, %arg12: memref<8x768xf32, #tpu.memory_space<vmem>>) attributes {dimension_semantics = [#tpu.dimension_semantics<parallel>], iteration_bounds = array<i64: 1>, scalar_prefetch = 0 : i64, scratch_operands = 1 : i64, tpu.core_type = #tpu.core_type<tc>, window_params = [{transform_indices = @transform_0, window_bounds = array<i64: 1, 8, 512>}, {pipeline_mode = #tpu.pipeline_mode<synchronous>, transform_indices = @transform_1, window_bounds = array<i64: 3, 8, 8>}, {pipeline_mode = #tpu.pipeline_mode<synchronous>, transform_indices = @transform_2, window_bounds = array<i64: 3, 8, 1>}, {pipeline_mode = #tpu.pipeline_mode<synchronous>, transform_indices = @transform_3, window_bounds = array<i64: 3, 8, 72>}, {pipeline_mode = #tpu.pipeline_mode<synchronous>, transform_indices = @transform_4, window_bounds = array<i64: 3, 8, 1>}, {pipeline_mode = #tpu.pipeline_mode<synchronous>, transform_indices = @transform_5, window_bounds = array<i64: 3, 8, 8>}, {pipeline_mode = #tpu.pipeline_mode<synchronous>, transform_indices = @transform_6, window_bounds = array<i64: 3, 8, 1>}, {pipeline_mode = #tpu.pipeline_mode<synchronous>, transform_indices = @transform_7, window_bounds = array<i64: 8, 8>}, {pipeline_mode = #tpu.pipeline_mode<synchronous>, transform_indices = @transform_8, window_bounds = array<i64: 8, 1>}, {pipeline_mode = #tpu.pipeline_mode<synchronous>, transform_indices = @transform_9, window_bounds = array<i64: 9, 512>}, {transform_indices = @transform_10, window_bounds = array<i64: 1, 8, 512>}]} {
    %cst = arith.constant 0.000000e+00 : f32
    %0 = vector.broadcast %cst : f32 to vector<8x128xf32>
    %c0 = arith.constant 0 : index
    %c0_0 = arith.constant 0 : index
    %1 = vector.load %arg12[%c0, %c0_0] : memref<8x768xf32, #tpu.memory_space<vmem>>, vector<8x128xf32>
    tpu.vector_store %arg12[%c0, %c0_0], %0 {strides = array<i32>} : memref<8x768xf32, #tpu.memory_space<vmem>>, vector<8x128xf32>,
    %cst_1 = arith.constant 0.000000e+00 : f32
    %2 = vector.broadcast %cst_1 : f32 to vector<8x128xf32>
    %c0_2 = arith.constant 0 : index
    %c640 = arith.constant 640 : index
    %3 = vector.load %arg12[%c0_2, %c640] : memref<8x768xf32, #tpu.memory_space<vmem>>, vector<8x128xf32>
    tpu.vector_store %arg12[%c0_2, %c640], %2 {strides = array<i32>} : memref<8x768xf32, #tpu.memory_space<vmem>>, vector<8x128xf32>,
    %c0_3 = arith.constant 0 : index
    %c0_4 = arith.constant 0 : index
    %4 = vector.load %arg10[%c0_3, %c0_4] : memref<9x512xf32, #tpu.memory_space<vmem>>, vector<1x512xf32>
    %c1 = arith.constant 1 : index
    %c0_5 = arith.constant 0 : index
    %5 = vector.load %arg10[%c1, %c0_5] : memref<9x512xf32, #tpu.memory_space<vmem>>, vector<1x512xf32>
    %c2 = arith.constant 2 : index
    %c0_6 = arith.constant 0 : index
    %6 = vector.load %arg10[%c2, %c0_6] : memref<9x512xf32, #tpu.memory_space<vmem>>, vector<1x512xf32>
    %c3 = arith.constant 3 : index
    %c0_7 = arith.constant 0 : index
    %7 = vector.load %arg10[%c3, %c0_7] : memref<9x512xf32, #tpu.memory_space<vmem>>, vector<1x512xf32>
    %c5 = arith.constant 5 : index
    %c0_8 = arith.constant 0 : index
    %8 = vector.load %arg10[%c5, %c0_8] : memref<9x512xf32, #tpu.memory_space<vmem>>, vector<1x512xf32>
    %c6 = arith.constant 6 : index
    %c0_9 = arith.constant 0 : index
    %9 = vector.load %arg10[%c6, %c0_9] : memref<9x512xf32, #tpu.memory_space<vmem>>, vector<1x512xf32>
    %c7 = arith.constant 7 : index
    %c0_10 = arith.constant 0 : index
    %10 = vector.load %arg10[%c7, %c0_10] : memref<9x512xf32, #tpu.memory_space<vmem>>, vector<1x512xf32>
    %c8 = arith.constant 8 : index
    %c0_11 = arith.constant 0 : index
    %11 = vector.load %arg10[%c8, %c0_11] : memref<9x512xf32, #tpu.memory_space<vmem>>, vector<1x512xf32>
    %c0_12 = arith.constant 0 : index
    %c0_13 = arith.constant 0 : index
    %c0_14 = arith.constant 0 : index
    %12 = vector.load %arg1[%c0_12, %c0_13, %c0_14] : memref<1x8x512xf32, #tpu.memory_space<vmem>>, vector<1x8x512xf32>
    %13 = vector.shape_cast %12 : vector<1x8x512xf32> to vector<8x512xf32>
    %14 = arith.truncf %13 : vector<8x512xf32> to vector<8x512xbf16>
    %c0_15 = arith.constant 0 : index
    %c0_16 = arith.constant 0 : index
    %15 = vector.load %arg8[%c0_15, %c0_16] : memref<8x8xbf16, #tpu.memory_space<vmem>>, vector<8x8xbf16>
    %cst_17 = arith.constant dense<0.000000e+00> : vector<8x512xf32>
    %16 = tpu.matmul %15, %14, %cst_17 {dimension_numbers = #tpu.dot_dimension_numbers<[1], [0], [0], [1], [0, 0, 1, 1], [], []>} : vector<8x8xbf16>, vector<8x512xbf16>, vector<8x512xf32> -> vector<8x512xf32>
    %c0_18 = arith.constant 0 : index
    %c0_19 = arith.constant 0 : index
    %17 = vector.load %arg9[%c0_18, %c0_19] : memref<8x1xf32, #tpu.memory_space<vmem>>, vector<8x1xf32>
    %18 = vector.broadcast %17 : vector<8x1xf32> to vector<8x512xf32>
    %19 = arith.addf %16, %18 : vector<8x512xf32>
    %c0_20 = arith.constant 0 : index
    %c0_21 = arith.constant 0 : index
    %c0_22 = arith.constant 0 : index
    %20 = vector.load %arg2[%c0_20, %c0_21, %c0_22] : memref<3x8x8xbf16, #tpu.memory_space<vmem>>, vector<1x8x8xbf16>
    %21 = vector.shape_cast %20 : vector<1x8x8xbf16> to vector<8x8xbf16>
    %cst_23 = arith.constant dense<0.000000e+00> : vector<8x512xf32>
    %22 = tpu.matmul %21, %14, %cst_23 {dimension_numbers = #tpu.dot_dimension_numbers<[1], [0], [0], [1], [0, 0, 1, 1], [], []>} : vector<8x8xbf16>, vector<8x512xbf16>, vector<8x512xf32> -> vector<8x512xf32>
    %c0_24 = arith.constant 0 : index
    %c0_25 = arith.constant 0 : index
    %c0_26 = arith.constant 0 : index
    %23 = vector.load %arg3[%c0_24, %c0_25, %c0_26] : memref<3x8x1xf32, #tpu.memory_space<vmem>>, vector<1x8x1xf32>
    %24 = vector.shape_cast %23 : vector<1x8x1xf32> to vector<8x1xf32>
    %25 = vector.broadcast %24 : vector<8x1xf32> to vector<8x512xf32>
    %26 = arith.addf %22, %25 : vector<8x512xf32>
    %cst_27 = arith.constant 0.000000e+00 : f32
    %27 = vector.broadcast %cst_27 : f32 to vector<8x512xf32>
    %28 = arith.maximumf %26, %27 : vector<8x512xf32>
    %c0_28 = arith.constant 0 : index
    %c128 = arith.constant 128 : index
    %29 = vector.load %arg12[%c0_28, %c128] : memref<8x768xf32, #tpu.memory_space<vmem>>, vector<8x512xf32>
    tpu.vector_store %arg12[%c0_28, %c128], %28 {strides = array<i32>} : memref<8x768xf32, #tpu.memory_space<vmem>>, vector<8x512xf32>,
    %c0_29 = arith.constant 0 : index
    %c94 = arith.constant 94 : index
    %30 = vector.load %arg12[%c0_29, %c94] : memref<8x768xf32, #tpu.memory_space<vmem>>, vector<8x512xf32>
    %31 = vector.broadcast %4 : vector<1x512xf32> to vector<8x512xf32>
    %32 = arith.mulf %30, %31 : vector<8x512xf32>
    %c0_30 = arith.constant 0 : index
    %c96 = arith.constant 96 : index
    %33 = vector.load %arg12[%c0_30, %c96] : memref<8x768xf32, #tpu.memory_space<vmem>>, vector<8x512xf32>
    %34 = vector.broadcast %5 : vector<1x512xf32> to vector<8x512xf32>
    %35 = arith.mulf %33, %34 : vector<8x512xf32>
    %c0_31 = arith.constant 0 : index
    %c98 = arith.constant 98 : index
    %36 = vector.load %arg12[%c0_31, %c98] : memref<8x768xf32, #tpu.memory_space<vmem>>, vector<8x512xf32>
    %37 = vector.broadcast %6 : vector<1x512xf32> to vector<8x512xf32>
    %38 = arith.mulf %36, %37 : vector<8x512xf32>
    %c0_32 = arith.constant 0 : index
    %c126 = arith.constant 126 : index
    %39 = vector.load %arg12[%c0_32, %c126] : memref<8x768xf32, #tpu.memory_space<vmem>>, vector<8x512xf32>
    %40 = vector.broadcast %7 : vector<1x512xf32> to vector<8x512xf32>
    %41 = arith.mulf %39, %40 : vector<8x512xf32>
    %c0_33 = arith.constant 0 : index
    %c130 = arith.constant 130 : index
    %42 = vector.load %arg12[%c0_33, %c130] : memref<8x768xf32, #tpu.memory_space<vmem>>, vector<8x512xf32>
    %43 = vector.broadcast %8 : vector<1x512xf32> to vector<8x512xf32>
    %44 = arith.mulf %42, %43 : vector<8x512xf32>
    %c0_34 = arith.constant 0 : index
    %c158 = arith.constant 158 : index
    %45 = vector.load %arg12[%c0_34, %c158] : memref<8x768xf32, #tpu.memory_space<vmem>>, vector<8x512xf32>
    %46 = vector.broadcast %9 : vector<1x512xf32> to vector<8x512xf32>
    %47 = arith.mulf %45, %46 : vector<8x512xf32>
    %c0_35 = arith.constant 0 : index
    %c160 = arith.constant 160 : index
    %48 = vector.load %arg12[%c0_35, %c160] : memref<8x768xf32, #tpu.memory_space<vmem>>, vector<8x512xf32>
    %49 = vector.broadcast %10 : vector<1x512xf32> to vector<8x512xf32>
    %50 = arith.mulf %48, %49 : vector<8x512xf32>
    %c0_36 = arith.constant 0 : index
    %c162 = arith.constant 162 : index
    %51 = vector.load %arg12[%c0_36, %c162] : memref<8x768xf32, #tpu.memory_space<vmem>>, vector<8x512xf32>
    %52 = vector.broadcast %11 : vector<1x512xf32> to vector<8x512xf32>
    %53 = arith.mulf %51, %52 : vector<8x512xf32>
    %54 = tpu.concatenate %32, %35, %38, %41, %28, %44, %47, %50, %53 in 0 : vector<8x512xf32>, vector<8x512xf32>, vector<8x512xf32>, vector<8x512xf32>, vector<8x512xf32>, vector<8x512xf32>, vector<8x512xf32>, vector<8x512xf32>, vector<8x512xf32> -> vector<72x512xf32>
    %55 = arith.truncf %54 : vector<72x512xf32> to vector<72x512xbf16>
    %c0_37 = arith.constant 0 : index
    %c0_38 = arith.constant 0 : index
    %c0_39 = arith.constant 0 : index
    %56 = vector.load %arg4[%c0_37, %c0_38, %c0_39] : memref<3x8x72xbf16, #tpu.memory_space<vmem>>, vector<1x8x72xbf16>
    %57 = vector.shape_cast %56 : vector<1x8x72xbf16> to vector<8x72xbf16>
    %cst_40 = arith.constant dense<0.000000e+00> : vector<8x512xf32>
    %58 = tpu.matmul %57, %55, %cst_40 {dimension_numbers = #tpu.dot_dimension_numbers<[1], [0], [0], [1], [0, 0, 1, 1], [], []>} : vector<8x72xbf16>, vector<72x512xbf16>, vector<8x512xf32> -> vector<8x512xf32>
    %c0_41 = arith.constant 0 : index
    %c0_42 = arith.constant 0 : index
    %c0_43 = arith.constant 0 : index
    %59 = vector.load %arg5[%c0_41, %c0_42, %c0_43] : memref<3x8x1xf32, #tpu.memory_space<vmem>>, vector<1x8x1xf32>
    %60 = vector.shape_cast %59 : vector<1x8x1xf32> to vector<8x1xf32>
    %61 = vector.broadcast %60 : vector<8x1xf32> to vector<8x512xf32>
    %62 = arith.addf %58, %61 : vector<8x512xf32>
    %cst_44 = arith.constant 0.000000e+00 : f32
    %63 = vector.broadcast %cst_44 : f32 to vector<8x512xf32>
    %64 = arith.maximumf %62, %63 : vector<8x512xf32>
    %c0_45 = arith.constant 0 : index
    %c0_46 = arith.constant 0 : index
    %c0_47 = arith.constant 0 : index
    %65 = vector.load %arg6[%c0_45, %c0_46, %c0_47] : memref<3x8x8xbf16, #tpu.memory_space<vmem>>, vector<1x8x8xbf16>
    %66 = vector.shape_cast %65 : vector<1x8x8xbf16> to vector<8x8xbf16>
    %67 = arith.truncf %64 : vector<8x512xf32> to vector<8x512xbf16>
    %cst_48 = arith.constant dense<0.000000e+00> : vector<8x512xf32>
    %68 = tpu.matmul %66, %67, %cst_48 {dimension_numbers = #tpu.dot_dimension_numbers<[1], [0], [0], [1], [0, 0, 1, 1], [], []>} : vector<8x8xbf16>, vector<8x512xbf16>, vector<8x512xf32> -> vector<8x512xf32>
    %c0_49 = arith.constant 0 : index
    %c0_50 = arith.constant 0 : index
    %c0_51 = arith.constant 0 : index
    %69 = vector.load %arg7[%c0_49, %c0_50, %c0_51] : memref<3x8x1xf32, #tpu.memory_space<vmem>>, vector<1x8x1xf32>
    %70 = vector.shape_cast %69 : vector<1x8x1xf32> to vector<8x1xf32>
    %71 = vector.broadcast %70 : vector<8x1xf32> to vector<8x512xf32>
    %72 = arith.addf %68, %71 : vector<8x512xf32>
    %cst_52 = arith.constant 0.000000e+00 : f32
    %73 = vector.broadcast %cst_52 : f32 to vector<8x512xf32>
    %74 = arith.maximumf %72, %73 : vector<8x512xf32>
    %75 = arith.addf %74, %19 : vector<8x512xf32>
    %cst_53 = arith.constant 0.000000e+00 : f32
    %76 = vector.broadcast %cst_53 : f32 to vector<8x512xf32>
    %77 = arith.maximumf %75, %76 : vector<8x512xf32>
    %78 = arith.truncf %77 : vector<8x512xf32> to vector<8x512xbf16>
    %c1_54 = arith.constant 1 : index
    %c0_55 = arith.constant 0 : index
    %c0_56 = arith.constant 0 : index
    %79 = vector.load %arg2[%c1_54, %c0_55, %c0_56] : memref<3x8x8xbf16, #tpu.memory_space<vmem>>, vector<1x8x8xbf16>
    %80 = vector.shape_cast %79 : vector<1x8x8xbf16> to vector<8x8xbf16>
    %cst_57 = arith.constant dense<0.000000e+00> : vector<8x512xf32>
    %81 = tpu.matmul %80, %78, %cst_57 {dimension_numbers = #tpu.dot_dimension_numbers<[1], [0], [0], [1], [0, 0, 1, 1], [], []>} : vector<8x8xbf16>, vector<8x512xbf16>, vector<8x512xf32> -> vector<8x512xf32>
    %c1_58 = arith.constant 1 : index
    %c0_59 = arith.constant 0 : index
    %c0_60 = arith.constant 0 : index
    %82 = vector.load %arg3[%c1_58, %c0_59, %c0_60] : memref<3x8x1xf32, #tpu.memory_space<vmem>>, vector<1x8x1xf32>
    %83 = vector.shape_cast %82 : vector<1x8x1xf32> to vector<8x1xf32>
    %84 = vector.broadcast %83 : vector<8x1xf32> to vector<8x512xf32>
    %85 = arith.addf %81, %84 : vector<8x512xf32>
    %cst_61 = arith.constant 0.000000e+00 : f32
    %86 = vector.broadcast %cst_61 : f32 to vector<8x512xf32>
    %87 = arith.maximumf %85, %86 : vector<8x512xf32>
    %c0_62 = arith.constant 0 : index
    %c128_63 = arith.constant 128 : index
    %88 = vector.load %arg12[%c0_62, %c128_63] : memref<8x768xf32, #tpu.memory_space<vmem>>, vector<8x512xf32>
    tpu.vector_store %arg12[%c0_62, %c128_63], %87 {strides = array<i32>} : memref<8x768xf32, #tpu.memory_space<vmem>>, vector<8x512xf32>,
    %c0_64 = arith.constant 0 : index
    %c94_65 = arith.constant 94 : index
    %89 = vector.load %arg12[%c0_64, %c94_65] : memref<8x768xf32, #tpu.memory_space<vmem>>, vector<8x512xf32>
    %90 = vector.broadcast %4 : vector<1x512xf32> to vector<8x512xf32>
    %91 = arith.mulf %89, %90 : vector<8x512xf32>
    %c0_66 = arith.constant 0 : index
    %c96_67 = arith.constant 96 : index
    %92 = vector.load %arg12[%c0_66, %c96_67] : memref<8x768xf32, #tpu.memory_space<vmem>>, vector<8x512xf32>
    %93 = vector.broadcast %5 : vector<1x512xf32> to vector<8x512xf32>
    %94 = arith.mulf %92, %93 : vector<8x512xf32>
    %c0_68 = arith.constant 0 : index
    %c98_69 = arith.constant 98 : index
    %95 = vector.load %arg12[%c0_68, %c98_69] : memref<8x768xf32, #tpu.memory_space<vmem>>, vector<8x512xf32>
    %96 = vector.broadcast %6 : vector<1x512xf32> to vector<8x512xf32>
    %97 = arith.mulf %95, %96 : vector<8x512xf32>
    %c0_70 = arith.constant 0 : index
    %c126_71 = arith.constant 126 : index
    %98 = vector.load %arg12[%c0_70, %c126_71] : memref<8x768xf32, #tpu.memory_space<vmem>>, vector<8x512xf32>
    %99 = vector.broadcast %7 : vector<1x512xf32> to vector<8x512xf32>
    %100 = arith.mulf %98, %99 : vector<8x512xf32>
    %c0_72 = arith.constant 0 : index
    %c130_73 = arith.constant 130 : index
    %101 = vector.load %arg12[%c0_72, %c130_73] : memref<8x768xf32, #tpu.memory_space<vmem>>, vector<8x512xf32>
    %102 = vector.broadcast %8 : vector<1x512xf32> to vector<8x512xf32>
    %103 = arith.mulf %101, %102 : vector<8x512xf32>
    %c0_74 = arith.constant 0 : index
    %c158_75 = arith.constant 158 : index
    %104 = vector.load %arg12[%c0_74, %c158_75] : memref<8x768xf32, #tpu.memory_space<vmem>>, vector<8x512xf32>
    %105 = vector.broadcast %9 : vector<1x512xf32> to vector<8x512xf32>
    %106 = arith.mulf %104, %105 : vector<8x512xf32>
    %c0_76 = arith.constant 0 : index
    %c160_77 = arith.constant 160 : index
    %107 = vector.load %arg12[%c0_76, %c160_77] : memref<8x768xf32, #tpu.memory_space<vmem>>, vector<8x512xf32>
    %108 = vector.broadcast %10 : vector<1x512xf32> to vector<8x512xf32>
    %109 = arith.mulf %107, %108 : vector<8x512xf32>
    %c0_78 = arith.constant 0 : index
    %c162_79 = arith.constant 162 : index
    %110 = vector.load %arg12[%c0_78, %c162_79] : memref<8x768xf32, #tpu.memory_space<vmem>>, vector<8x512xf32>
    %111 = vector.broadcast %11 : vector<1x512xf32> to vector<8x512xf32>
    %112 = arith.mulf %110, %111 : vector<8x512xf32>
    %113 = tpu.concatenate %91, %94, %97, %100, %87, %103, %106, %109, %112 in 0 : vector<8x512xf32>, vector<8x512xf32>, vector<8x512xf32>, vector<8x512xf32>, vector<8x512xf32>, vector<8x512xf32>, vector<8x512xf32>, vector<8x512xf32>, vector<8x512xf32> -> vector<72x512xf32>
    %114 = arith.truncf %113 : vector<72x512xf32> to vector<72x512xbf16>
    %c1_80 = arith.constant 1 : index
    %c0_81 = arith.constant 0 : index
    %c0_82 = arith.constant 0 : index
    %115 = vector.load %arg4[%c1_80, %c0_81, %c0_82] : memref<3x8x72xbf16, #tpu.memory_space<vmem>>, vector<1x8x72xbf16>
    %116 = vector.shape_cast %115 : vector<1x8x72xbf16> to vector<8x72xbf16>
    %cst_83 = arith.constant dense<0.000000e+00> : vector<8x512xf32>
    %117 = tpu.matmul %116, %114, %cst_83 {dimension_numbers = #tpu.dot_dimension_numbers<[1], [0], [0], [1], [0, 0, 1, 1], [], []>} : vector<8x72xbf16>, vector<72x512xbf16>, vector<8x512xf32> -> vector<8x512xf32>
    %c1_84 = arith.constant 1 : index
    %c0_85 = arith.constant 0 : index
    %c0_86 = arith.constant 0 : index
    %118 = vector.load %arg5[%c1_84, %c0_85, %c0_86] : memref<3x8x1xf32, #tpu.memory_space<vmem>>, vector<1x8x1xf32>
    %119 = vector.shape_cast %118 : vector<1x8x1xf32> to vector<8x1xf32>
    %120 = vector.broadcast %119 : vector<8x1xf32> to vector<8x512xf32>
    %121 = arith.addf %117, %120 : vector<8x512xf32>
    %cst_87 = arith.constant 0.000000e+00 : f32
    %122 = vector.broadcast %cst_87 : f32 to vector<8x512xf32>
    %123 = arith.maximumf %121, %122 : vector<8x512xf32>
    %c1_88 = arith.constant 1 : index
    %c0_89 = arith.constant 0 : index
    %c0_90 = arith.constant 0 : index
    %124 = vector.load %arg6[%c1_88, %c0_89, %c0_90] : memref<3x8x8xbf16, #tpu.memory_space<vmem>>, vector<1x8x8xbf16>
    %125 = vector.shape_cast %124 : vector<1x8x8xbf16> to vector<8x8xbf16>
    %126 = arith.truncf %123 : vector<8x512xf32> to vector<8x512xbf16>
    %cst_91 = arith.constant dense<0.000000e+00> : vector<8x512xf32>
    %127 = tpu.matmul %125, %126, %cst_91 {dimension_numbers = #tpu.dot_dimension_numbers<[1], [0], [0], [1], [0, 0, 1, 1], [], []>} : vector<8x8xbf16>, vector<8x512xbf16>, vector<8x512xf32> -> vector<8x512xf32>
    %c1_92 = arith.constant 1 : index
    %c0_93 = arith.constant 0 : index
    %c0_94 = arith.constant 0 : index
    %128 = vector.load %arg7[%c1_92, %c0_93, %c0_94] : memref<3x8x1xf32, #tpu.memory_space<vmem>>, vector<1x8x1xf32>
    %129 = vector.shape_cast %128 : vector<1x8x1xf32> to vector<8x1xf32>
    %130 = vector.broadcast %129 : vector<8x1xf32> to vector<8x512xf32>
    %131 = arith.addf %127, %130 : vector<8x512xf32>
    %cst_95 = arith.constant 0.000000e+00 : f32
    %132 = vector.broadcast %cst_95 : f32 to vector<8x512xf32>
    %133 = arith.maximumf %131, %132 : vector<8x512xf32>
    %134 = arith.addf %133, %77 : vector<8x512xf32>
    %cst_96 = arith.constant 0.000000e+00 : f32
    %135 = vector.broadcast %cst_96 : f32 to vector<8x512xf32>
    %136 = arith.maximumf %134, %135 : vector<8x512xf32>
    %137 = arith.truncf %136 : vector<8x512xf32> to vector<8x512xbf16>
    %c2_97 = arith.constant 2 : index
    %c0_98 = arith.constant 0 : index
    %c0_99 = arith.constant 0 : index
    %138 = vector.load %arg2[%c2_97, %c0_98, %c0_99] : memref<3x8x8xbf16, #tpu.memory_space<vmem>>, vector<1x8x8xbf16>
    %139 = vector.shape_cast %138 : vector<1x8x8xbf16> to vector<8x8xbf16>
    %cst_100 = arith.constant dense<0.000000e+00> : vector<8x512xf32>
    %140 = tpu.matmul %139, %137, %cst_100 {dimension_numbers = #tpu.dot_dimension_numbers<[1], [0], [0], [1], [0, 0, 1, 1], [], []>} : vector<8x8xbf16>, vector<8x512xbf16>, vector<8x512xf32> -> vector<8x512xf32>
    %c2_101 = arith.constant 2 : index
    %c0_102 = arith.constant 0 : index
    %c0_103 = arith.constant 0 : index
    %141 = vector.load %arg3[%c2_101, %c0_102, %c0_103] : memref<3x8x1xf32, #tpu.memory_space<vmem>>, vector<1x8x1xf32>
    %142 = vector.shape_cast %141 : vector<1x8x1xf32> to vector<8x1xf32>
    %143 = vector.broadcast %142 : vector<8x1xf32> to vector<8x512xf32>
    %144 = arith.addf %140, %143 : vector<8x512xf32>
    %cst_104 = arith.constant 0.000000e+00 : f32
    %145 = vector.broadcast %cst_104 : f32 to vector<8x512xf32>
    %146 = arith.maximumf %144, %145 : vector<8x512xf32>
    %c0_105 = arith.constant 0 : index
    %c128_106 = arith.constant 128 : index
    %147 = vector.load %arg12[%c0_105, %c128_106] : memref<8x768xf32, #tpu.memory_space<vmem>>, vector<8x512xf32>
    tpu.vector_store %arg12[%c0_105, %c128_106], %146 {strides = array<i32>} : memref<8x768xf32, #tpu.memory_space<vmem>>, vector<8x512xf32>,
    %c0_107 = arith.constant 0 : index
    %c94_108 = arith.constant 94 : index
    %148 = vector.load %arg12[%c0_107, %c94_108] : memref<8x768xf32, #tpu.memory_space<vmem>>, vector<8x512xf32>
    %149 = vector.broadcast %4 : vector<1x512xf32> to vector<8x512xf32>
    %150 = arith.mulf %148, %149 : vector<8x512xf32>
    %c0_109 = arith.constant 0 : index
    %c96_110 = arith.constant 96 : index
    %151 = vector.load %arg12[%c0_109, %c96_110] : memref<8x768xf32, #tpu.memory_space<vmem>>, vector<8x512xf32>
    %152 = vector.broadcast %5 : vector<1x512xf32> to vector<8x512xf32>
    %153 = arith.mulf %151, %152 : vector<8x512xf32>
    %c0_111 = arith.constant 0 : index
    %c98_112 = arith.constant 98 : index
    %154 = vector.load %arg12[%c0_111, %c98_112] : memref<8x768xf32, #tpu.memory_space<vmem>>, vector<8x512xf32>
    %155 = vector.broadcast %6 : vector<1x512xf32> to vector<8x512xf32>
    %156 = arith.mulf %154, %155 : vector<8x512xf32>
    %c0_113 = arith.constant 0 : index
    %c126_114 = arith.constant 126 : index
    %157 = vector.load %arg12[%c0_113, %c126_114] : memref<8x768xf32, #tpu.memory_space<vmem>>, vector<8x512xf32>
    %158 = vector.broadcast %7 : vector<1x512xf32> to vector<8x512xf32>
    %159 = arith.mulf %157, %158 : vector<8x512xf32>
    %c0_115 = arith.constant 0 : index
    %c130_116 = arith.constant 130 : index
    %160 = vector.load %arg12[%c0_115, %c130_116] : memref<8x768xf32, #tpu.memory_space<vmem>>, vector<8x512xf32>
    %161 = vector.broadcast %8 : vector<1x512xf32> to vector<8x512xf32>
    %162 = arith.mulf %160, %161 : vector<8x512xf32>
    %c0_117 = arith.constant 0 : index
    %c158_118 = arith.constant 158 : index
    %163 = vector.load %arg12[%c0_117, %c158_118] : memref<8x768xf32, #tpu.memory_space<vmem>>, vector<8x512xf32>
    %164 = vector.broadcast %9 : vector<1x512xf32> to vector<8x512xf32>
    %165 = arith.mulf %163, %164 : vector<8x512xf32>
    %c0_119 = arith.constant 0 : index
    %c160_120 = arith.constant 160 : index
    %166 = vector.load %arg12[%c0_119, %c160_120] : memref<8x768xf32, #tpu.memory_space<vmem>>, vector<8x512xf32>
    %167 = vector.broadcast %10 : vector<1x512xf32> to vector<8x512xf32>
    %168 = arith.mulf %166, %167 : vector<8x512xf32>
    %c0_121 = arith.constant 0 : index
    %c162_122 = arith.constant 162 : index
    %169 = vector.load %arg12[%c0_121, %c162_122] : memref<8x768xf32, #tpu.memory_space<vmem>>, vector<8x512xf32>
    %170 = vector.broadcast %11 : vector<1x512xf32> to vector<8x512xf32>
    %171 = arith.mulf %169, %170 : vector<8x512xf32>
    %172 = tpu.concatenate %150, %153, %156, %159, %146, %162, %165, %168, %171 in 0 : vector<8x512xf32>, vector<8x512xf32>, vector<8x512xf32>, vector<8x512xf32>, vector<8x512xf32>, vector<8x512xf32>, vector<8x512xf32>, vector<8x512xf32>, vector<8x512xf32> -> vector<72x512xf32>
    %173 = arith.truncf %172 : vector<72x512xf32> to vector<72x512xbf16>
    %c2_123 = arith.constant 2 : index
    %c0_124 = arith.constant 0 : index
    %c0_125 = arith.constant 0 : index
    %174 = vector.load %arg4[%c2_123, %c0_124, %c0_125] : memref<3x8x72xbf16, #tpu.memory_space<vmem>>, vector<1x8x72xbf16>
    %175 = vector.shape_cast %174 : vector<1x8x72xbf16> to vector<8x72xbf16>
    %cst_126 = arith.constant dense<0.000000e+00> : vector<8x512xf32>
    %176 = tpu.matmul %175, %173, %cst_126 {dimension_numbers = #tpu.dot_dimension_numbers<[1], [0], [0], [1], [0, 0, 1, 1], [], []>} : vector<8x72xbf16>, vector<72x512xbf16>, vector<8x512xf32> -> vector<8x512xf32>
    %c2_127 = arith.constant 2 : index
    %c0_128 = arith.constant 0 : index
    %c0_129 = arith.constant 0 : index
    %177 = vector.load %arg5[%c2_127, %c0_128, %c0_129] : memref<3x8x1xf32, #tpu.memory_space<vmem>>, vector<1x8x1xf32>
    %178 = vector.shape_cast %177 : vector<1x8x1xf32> to vector<8x1xf32>
    %179 = vector.broadcast %178 : vector<8x1xf32> to vector<8x512xf32>
    %180 = arith.addf %176, %179 : vector<8x512xf32>
    %cst_130 = arith.constant 0.000000e+00 : f32
    %181 = vector.broadcast %cst_130 : f32 to vector<8x512xf32>
    %182 = arith.maximumf %180, %181 : vector<8x512xf32>
    %c2_131 = arith.constant 2 : index
    %c0_132 = arith.constant 0 : index
    %c0_133 = arith.constant 0 : index
    %183 = vector.load %arg6[%c2_131, %c0_132, %c0_133] : memref<3x8x8xbf16, #tpu.memory_space<vmem>>, vector<1x8x8xbf16>
    %184 = vector.shape_cast %183 : vector<1x8x8xbf16> to vector<8x8xbf16>
    %185 = arith.truncf %182 : vector<8x512xf32> to vector<8x512xbf16>
    %cst_134 = arith.constant dense<0.000000e+00> : vector<8x512xf32>
    %186 = tpu.matmul %184, %185, %cst_134 {dimension_numbers = #tpu.dot_dimension_numbers<[1], [0], [0], [1], [0, 0, 1, 1], [], []>} : vector<8x8xbf16>, vector<8x512xbf16>, vector<8x512xf32> -> vector<8x512xf32>
    %c2_135 = arith.constant 2 : index
    %c0_136 = arith.constant 0 : index
    %c0_137 = arith.constant 0 : index
    %187 = vector.load %arg7[%c2_135, %c0_136, %c0_137] : memref<3x8x1xf32, #tpu.memory_space<vmem>>, vector<1x8x1xf32>
    %188 = vector.shape_cast %187 : vector<1x8x1xf32> to vector<8x1xf32>
    %189 = vector.broadcast %188 : vector<8x1xf32> to vector<8x512xf32>
    %190 = arith.addf %186, %189 : vector<8x512xf32>
    %cst_138 = arith.constant 0.000000e+00 : f32
    %191 = vector.broadcast %cst_138 : f32 to vector<8x512xf32>
    %192 = arith.maximumf %190, %191 : vector<8x512xf32>
    %193 = arith.addf %192, %136 : vector<8x512xf32>
    %cst_139 = arith.constant 0.000000e+00 : f32
    %194 = vector.broadcast %cst_139 : f32 to vector<8x512xf32>
    %195 = arith.maximumf %193, %194 : vector<8x512xf32>
    %c0_140 = arith.constant 0 : index
    %c0_141 = arith.constant 0 : index
    %c0_142 = arith.constant 0 : index
    %196 = vector.load %arg11[%c0_140, %c0_141, %c0_142] : memref<1x8x512xf32, #tpu.memory_space<vmem>>, vector<1x8x512xf32>
    %197 = vector.shape_cast %196 : vector<1x8x512xf32> to vector<8x512xf32>
    %198 = vector.shape_cast %195 : vector<8x512xf32> to vector<1x8x512xf32>
    tpu.vector_store %arg11[%c0_140, %c0_141, %c0_142], %198 {strides = array<i32>} : memref<1x8x512xf32, #tpu.memory_space<vmem>>, vector<1x8x512xf32>,
    return
  }
  func.func @transform_0(%arg0: i32) -> (i32, i32, i32) {
    %c0_i32 = arith.constant 0 : i32
    %c0_i32_0 = arith.constant 0 : i32
    %c0_i32_1 = arith.constant 0 : i32
    return %arg0, %c0_i32, %c0_i32_0 : i32, i32, i32
  }
  func.func @transform_1(%arg0: i32) -> (i32, i32, i32) {
    %c0_i32 = arith.constant 0 : i32
    %c0_i32_0 = arith.constant 0 : i32
    %c0_i32_1 = arith.constant 0 : i32
    %c0_i32_2 = arith.constant 0 : i32
    return %c0_i32, %c0_i32_0, %c0_i32_1 : i32, i32, i32
  }
  func.func @transform_2(%arg0: i32) -> (i32, i32, i32) {
    %c0_i32 = arith.constant 0 : i32
    %c0_i32_0 = arith.constant 0 : i32
    %c0_i32_1 = arith.constant 0 : i32
    %c0_i32_2 = arith.constant 0 : i32
    return %c0_i32, %c0_i32_0, %c0_i32_1 : i32, i32, i32
  }
  func.func @transform_3(%arg0: i32) -> (i32, i32, i32) {
    %c0_i32 = arith.constant 0 : i32
    %c0_i32_0 = arith.constant 0 : i32
    %c0_i32_1 = arith.constant 0 : i32
    %c0_i32_2 = arith.constant 0 : i32
    return %c0_i32, %c0_i32_0, %c0_i32_1 : i32, i32, i32
  }
  func.func @transform_4(%arg0: i32) -> (i32, i32, i32) {
    %c0_i32 = arith.constant 0 : i32
    %c0_i32_0 = arith.constant 0 : i32
    %c0_i32_1 = arith.constant 0 : i32
    %c0_i32_2 = arith.constant 0 : i32
    return %c0_i32, %c0_i32_0, %c0_i32_1 : i32, i32, i32
  }
  func.func @transform_5(%arg0: i32) -> (i32, i32, i32) {
    %c0_i32 = arith.constant 0 : i32
    %c0_i32_0 = arith.constant 0 : i32
    %c0_i32_1 = arith.constant 0 : i32
    %c0_i32_2 = arith.constant 0 : i32
    return %c0_i32, %c0_i32_0, %c0_i32_1 : i32, i32, i32
  }
  func.func @transform_6(%arg0: i32) -> (i32, i32, i32) {
    %c0_i32 = arith.constant 0 : i32
    %c0_i32_0 = arith.constant 0 : i32
    %c0_i32_1 = arith.constant 0 : i32
    %c0_i32_2 = arith.constant 0 : i32
    return %c0_i32, %c0_i32_0, %c0_i32_1 : i32, i32, i32
  }
  func.func @transform_7(%arg0: i32) -> (i32, i32) {
    %c0_i32 = arith.constant 0 : i32
    %c0_i32_0 = arith.constant 0 : i32
    %c0_i32_1 = arith.constant 0 : i32
    return %c0_i32, %c0_i32_0 : i32, i32
  }
  func.func @transform_8(%arg0: i32) -> (i32, i32) {
    %c0_i32 = arith.constant 0 : i32
    %c0_i32_0 = arith.constant 0 : i32
    %c0_i32_1 = arith.constant 0 : i32
    return %c0_i32, %c0_i32_0 : i32, i32
  }
  func.func @transform_9(%arg0: i32) -> (i32, i32) {
    %c0_i32 = arith.constant 0 : i32
    %c0_i32_0 = arith.constant 0 : i32
    %c0_i32_1 = arith.constant 0 : i32
    return %c0_i32, %c0_i32_0 : i32, i32
  }
  func.func @transform_10(%arg0: i32) -> (i32, i32, i32) {
    %c0_i32 = arith.constant 0 : i32
    %c0_i32_0 = arith.constant 0 : i32
    %c0_i32_1 = arith.constant 0 : i32
    return %arg0, %c0_i32, %c0_i32_0 : i32, i32, i32
  }
}

</mosaic_0001>

<bundles_post_ra>
// kernel: tpu_custom_call.1
= control target key start
LH: loop header
LB: loop body
LE: loop exit
PB: predicated region body
PF: predicated region fallthrough
CT: control target
= control target key end

     0   :  { %15 = vsyncpa [#allocation4], 0  ;;  %s4319_s0 = inlined_call_operand.vmem [shape: f32[1,8,512], index: 0, kind: input, shape index: {}]   ;;  %s4320_s1 = inlined_call_operand.vmem [shape: bf16[3,8,8], index: 1, kind: input, shape index: {}]   ;;  %s4321_s2 = inlined_call_operand.vmem [shape: f32[3,8,1], index: 2, kind: input, shape index: {}]   ;;  %s4322_s3 = inlined_call_operand.vmem [shape: bf16[3,8,72], index: 3, kind: input, shape index: {}]   ;;  %s4323_s4 = inlined_call_operand.vmem [shape: f32[3,8,1], index: 4, kind: input, shape index: {}]   ;;  %s4324_s5 = inlined_call_operand.hbm [shape: bf16[3,8,8], index: 5, kind: input, shape index: {}]   ;;  %s4325_s6 = inlined_call_operand.vmem [shape: f32[3,8,1], index: 6, kind: input, shape index: {}]   ;;  %s4326_s7 = inlined_call_operand.vmem [shape: bf16[8,8], index: 7, kind: input, shape index: {}]   ;;  %s4327_s8 = inlined_call_operand.vmem [shape: f32[8,1], index: 8, kind: input, shape index: {}]   ;;  %s4328_s9 = inlined_call_operand.vmem [shape: f32[9,512], index: 9, kind: input, shape index: {}]   ;;  %s4329_s10 = inlined_call_operand.hbm [shape: f32[1,8,512], index: 10, kind: output, shape index: {}]  }
   0x1   :  { %16 = vsyncpa [#allocation5], 0  ;;  %s2994_s13 = smov [#allocation3]   ;;  %s2946_s17 = scalar_lea.hbm %s4324_s5, 192 }
   0x2   :  { %s32_s14 = sshll.u32 %s2994_s13, 4  ;;  %p2947_p0 = scmp.ne.s32.totalorder %s4324_s5, %s2946_s17  ;;  %s33_s14 = int_to_ptr.vmem [resolvable:$true] %s32_s14 }
   0x3   :  { %p2950_p1 = scmp.lt.u32.totalorder %s2946_s17, %s4324_s5 }
   0x5   :  { %p2952_p2 = pnand %p2950_p1, %p2947_p0 }
   0x7   :  { %2955 = shalt.err (!%p2952_p2)
}
   0x8   :  { %s2956_s22 = scalar_lea.vmem %s33_s14, 192  ;;  %p2961_p4 = scmp.lt.s32.totalorder %s33_s14, %s33_s14 }
   0x9   :  { %p2957_p3 = scmp.ne.s32.totalorder %s33_s14, %s2956_s22  ;;  %p2962_p5 = scmp.lt.s32.totalorder %s2956_s22, %s2956_s22 }
   0xb   :  { %p2963_p6 = por %p2962_p5, %p2961_p4 }
   0xd   :  { %p2964_p7 = pnand %p2963_p6, %p2957_p3 }
   0xf   :  { %2967 = shalt.err (!%p2964_p7)
}
  0x10   :  { %s2995_s23 = smov 64   ;;  %s2996_s24 = smov 4  }
  0x11   :  { %38 = dma.hbm_to_vmem [thread:$0]  %s4324_s5, 192, %s33_s14, [#allocation4], %s2995_s23, %s2995_s23, %s2996_s24  }
  0x12   :  { %2990 = dma.done.wait [#allocation4], 192  }
  0x13   :  { %2991 = vsyncadd [#allocation4], 4294967104  ;;  %v288_v0 = vlaneseq  ;;  %v4330_v1 = vmov 0   ;;  %v69_v4 = vld [vmem:[%s4319_s0 + $0x8] sm:$0xff]  ;;  %vm87_vm0 = vcmask 1043456   ;;  %v71_v5 = vld [vmem:[%s4319_s0 + $0x18] sm:$0xff] }
  0x14   :  { %132 = vmatprep.mubr.bf16.mxu0 %v4330_v1  ;;  %173 = vmatprep.mubr.bf16.mxu1 %v4330_v1  ;;  %v68_v6 = vld [vmem:[%s4319_s0] sm:$0xff]  ;;  %v73_v7 = vpack.c.bf16 %v69_v4, %v69_v4  ;;  %v75_v8 = vpack.c.bf16 %v71_v5, %v71_v5  ;;  %v70_v10 = vld [vmem:[%s4319_s0 + $0x10] sm:$0xff]  ;;  %vm83_vm1 = vcmask 64512   ;;  %s2998_s19 = smov 96   ;;  %s2999_s24 = smov 98   ;;  %vm351_vm2 = vcmask 785408  }
  0x15   :  { %2704 = vset.pattern.permute.xlu0 %v4330_v1  ;;  %v289_v2 = vshrl.u32 %v288_v0, 7  ;;  %2785 = vset.pattern.permute.xlu1 %v4330_v1  ;;  %v72_v9 = vpack.c.bf16 %v68_v6, %v68_v6  ;;  %v74_v11 = vpack.c.bf16 %v70_v10, %v70_v10  ;;  %v183_v12 = vld [vmem:[%s4321_s2] sm:$0xff]  ;;  %s3000_s27 = smov 126   ;;  %s3001_s29 = smov 2   ;;  %vm390_vm3 = vcmask 801792  }
  0x16   :  { %v2630_v13 = vld [vmem:[%s4328_s9 + $0x1] ss:$8 sm:$0xf]  ;;  %2637 = vmatprep.subr.msk.bf16.mxu0 %vm87_vm0, %v73_v7  ;;  %2639 = vmatprep.subr.msk.bf16.mxu1 %vm87_vm0, %v75_v8  ;;  %v2631_v23 = vld [vmem:[%s4328_s9 + $0x2] ss:$8 sm:$0xf] }
  0x17   :  { %v3084_v3 = vsub.s32 1, %v289_v2  ;;  %v3104_v14 = vsub.s32 0, %v289_v2  ;;  %v89_v15 = vsel %vm87_vm0, %v72_v9, 0  ;;  %v3110_v17 = vsub.s32 2, %v289_v2  ;;  %v76_v19 = vld [vmem:[%s4326_s7] sm:$0xf]  ;;  %186 = vperm.xlu0 %2704, %v183_v12  }
  0x18   :  { %101 = vmatpush1.bf16.msra.mxu0 %v89_v15  ;;  %v95_v18 = vsel %vm87_vm0, %v74_v11, 0  ;;  %v3120_v21 = vsub.s32 3, %v289_v2  ;;  %v182_v26 = vld [vmem:[%s4320_s1] sm:$0xf]  ;;  %s3002_s12 = smov 30   ;;  %s3003_s15 = smov 32  }
  0x19   :  { %v334_v16 = vrot.slane %v2630_v13, %v3084_v3  ;;  %142 = vmatpush1.bf16.msra.mxu1 %v95_v18  ;;  %2641 = vmatprep.subr.msk.bf16.mxu0 %vm87_vm0, %v73_v7  ;;  %v330_v20 = vrot.slane %v2630_v13, %v3104_v14  ;;  %v338_v22 = vrot.slane %v2630_v13, %v3110_v17  ;;  %v2632_v29 = vld [vmem:[%s4328_s9 + $0x3] ss:$8 sm:$0xf]  ;;  %v2633_v34 = vld [vmem:[%s4328_s9 + $0x5] ss:$8 sm:$0xf] }
  0x1a   :  { %2643 = vmatprep.subr.msk.bf16.mxu1 %vm87_vm0, %v75_v8  ;;  %v342_v24 = vrot.slane %v2630_v13, %v3120_v21  ;;  %v369_v25 = vrot.slane %v2631_v23, %v3104_v14  ;;  %v373_v27 = vrot.slane %v2631_v23, %v3084_v3  ;;  %v377_v28 = vrot.slane %v2631_v23, %v3110_v17  ;;  %v2634_v39 = vld [vmem:[%s4328_s9 + $0x6] ss:$8 sm:$0xf]  ;;  %v2635_v44 = vld [vmem:[%s4328_s9 + $0x7] ss:$8 sm:$0xf] }
  0x1b   :  { %345 = vrot.lane.b32.xlu1 %v334_v16, %s2998_s19  ;;  %2638 = vmatmul.mubr.msk.bf16.vlgmr.msra.gmra.mrb[0].mxu0 %vm83_vm1, %v76_v19  ;;  %v381_v30 = vrot.slane %v2631_v23, %v3120_v21  ;;  %v408_v31 = vrot.slane %v2632_v29, %v3104_v14  ;;  %v412_v32 = vrot.slane %v2632_v29, %v3084_v3  ;;  %v2636_v49 = vld [vmem:[%s4328_s9 + $0x20] ss:$8 sm:$0xf]  ;;  %s3004_s0 = smov 34   ;;  %s3005_s20 = smov 94   ;;  %vm429_vm4 = vcmask 1031168  }
  0x1c   :  { %2640 = vmatmul.mubr.msk.bf16.vlgmr.msra.gmra.mrb[0].mxu1 %vm83_vm1, %v76_v19  ;;  %193 = vmatpush1.bf16.msra.mxu0 %v89_v15  ;;  %v416_v33 = vrot.slane %v2632_v29, %v3110_v17  ;;  %v420_v35 = vrot.slane %v2632_v29, %v3120_v21  ;;  %v452_v36 = vrot.slane %v2633_v34, %v3104_v14  ;;  %v53_v54 = vld [vmem:[%s4328_s9] ss:$8 sm:$0xf]  ;;  %s3006_s9 = smov 124   ;;  %s3007_s21 = smov 92   ;;  %vm473_vm5 = vcmask 15360  }
  0x1d   :  { %234 = vmatpush1.bf16.msra.mxu1 %v95_v18  ;;  %224 = vmatprep.mubr.bf16.mxu0 %v4330_v1  ;;  %v456_v37 = vrot.slane %v2633_v34, %v3084_v3  ;;  %v460_v38 = vrot.slane %v2633_v34, %v3110_v17  ;;  %v464_v40 = vrot.slane %v2633_v34, %v3120_v21  ;;  %s3008_s22 = smov 62   ;;  %vm512_vm6 = vcmask 244736  }
  0x1e   :  { %265 = vmatprep.mubr.bf16.mxu1 %v4330_v1  ;;  %343 = vrot.lane.b32.xlu0 %v330_v20, %s2998_s19  ;;  %v491_v41 = vrot.slane %v2634_v39, %v3104_v14  ;;  %v495_v42 = vrot.slane %v2634_v39, %v3084_v3  ;;  %v499_v43 = vrot.slane %v2634_v39, %v3110_v17  ;;  %vm551_vm7 = vcmask 261120  }
  0x1f   :  { %347 = vrot.lane.b32.xlu1 %v338_v22, %s2998_s19  ;;  %v503_v45 = vrot.slane %v2634_v39, %v3120_v21  ;;  %v530_v46 = vrot.slane %v2635_v44, %v3104_v14  ;;  %v534_v47 = vrot.slane %v2635_v44, %v3084_v3  ;;  %v538_v48 = vrot.slane %v2635_v44, %v3110_v17 }
  0x20   :  { %v542_v50 = vrot.slane %v2635_v44, %v3120_v21  ;;  %v569_v51 = vrot.slane %v2636_v49, %v3104_v14  ;;  %v573_v52 = vrot.slane %v2636_v49, %v3084_v3  ;;  %v577_v53 = vrot.slane %v2636_v49, %v3110_v17 }
  0x21   :  { %v581_v55 = vrot.slane %v2636_v49, %v3120_v21  ;;  %v291_v56 = vrot.slane %v53_v54, %v3104_v14  ;;  %v295_v57 = vrot.slane %v53_v54, %v3084_v3  ;;  %v299_v58 = vrot.slane %v53_v54, %v3110_v17 }
  0x22   :  { %349 = vrot.lane.b32.xlu0 %v342_v24, %s2998_s19  ;;  %v303_v59 = vrot.slane %v53_v54, %v3120_v21  ;;  %vm590_vm8 = vcmask 277504   ;;  %vm312_vm9 = vcmask 769024   ;;  %vm643_vm10 = vcmask 1014784  }
  0x23   :  { %2642 = vmatmul.mubr.msk.bf16.vlgmr.msra.gmra.mrb[4].mxu0 %vm83_vm1, %v182_v26  ;;  %382 = vrot.lane.b32.xlu1 %v369_v25, %s2999_s24  ;;  %vm712_vm11 = vcmask 752640   ;;  %vm762_vm12 = vcmask 506880   ;;  %vm737_vm13 = vcmask 523264   ;;  %vm787_vm14 = vcmask 490496  }
  0x24   :  { %2644 = vmatmul.mubr.msk.bf16.vlgmr.msra.gmra.mrb[4].mxu1 %vm83_vm1, %v182_v26  ;;  %989 = vmatprep.mubr.bf16.mxu0 %v4330_v1  ;;  %vm941_vm15 = vcmask 588800  }
  0x25   :  { %1030 = vmatprep.mubr.bf16.mxu1 %v4330_v1 }
  0x26   :  { %384 = vrot.lane.b32.xlu0 %v373_v27, %s2999_s24 }
  0x27   :  { %386 = vrot.lane.b32.xlu1 %v377_v28, %s2999_s24 }
  0x2a   :  { %388 = vrot.lane.b32.xlu0 %v381_v30, %s2999_s24  ;;  %s3009_s24 = smov 60  }
  0x2b   :  { %421 = vrot.lane.b32.xlu1 %v408_v31, %s3000_s27 }
  0x2e   :  { %423 = vrot.lane.b32.xlu0 %v412_v32, %s3000_s27 }
  0x2f   :  { %425 = vrot.lane.b32.xlu1 %v416_v33, %s3000_s27 }
  0x32   :  { %427 = vrot.lane.b32.xlu0 %v420_v35, %s3000_s27 }
  0x33   :  { %465 = vrot.lane.b32.xlu1 %v452_v36, %s3001_s29 }
  0x36   :  { %467 = vrot.lane.b32.xlu0 %v456_v37, %s3001_s29 }
  0x37   :  { %469 = vrot.lane.b32.xlu1 %v460_v38, %s3001_s29 }
  0x3a   :  { %471 = vrot.lane.b32.xlu0 %v464_v40, %s3001_s29 }
  0x3b   :  { %504 = vrot.lane.b32.xlu1 %v491_v41, %s3002_s12 }
  0x3e   :  { %506 = vrot.lane.b32.xlu0 %v495_v42, %s3002_s12 }
  0x3f   :  { %508 = vrot.lane.b32.xlu1 %v499_v43, %s3002_s12 }
  0x42   :  { %510 = vrot.lane.b32.xlu0 %v503_v45, %s3002_s12 }
  0x43   :  { %543 = vrot.lane.b32.xlu1 %v530_v46, %s3003_s15 }
  0x46   :  { %545 = vrot.lane.b32.xlu0 %v534_v47, %s3003_s15 }
  0x47   :  { %547 = vrot.lane.b32.xlu1 %v538_v48, %s3003_s15 }
  0x4a   :  { %549 = vrot.lane.b32.xlu0 %v542_v50, %s3003_s15 }
  0x4b   :  { %582 = vrot.lane.b32.xlu1 %v569_v51, %s3004_s0 }
  0x4e   :  { %584 = vrot.lane.b32.xlu0 %v573_v52, %s3004_s0 }
  0x4f   :  { %586 = vrot.lane.b32.xlu1 %v577_v53, %s3004_s0 }
  0x52   :  { %588 = vrot.lane.b32.xlu0 %v581_v55, %s3004_s0 }
  0x53   :  { %304 = vrot.lane.b32.xlu1 %v291_v56, %s3005_s20 }
  0x56   :  { %306 = vrot.lane.b32.xlu0 %v295_v57, %s3005_s20 }
  0x57   :  { %308 = vrot.lane.b32.xlu1 %v299_v58, %s3005_s20 }
  0x5a   :  { %310 = vrot.lane.b32.xlu0 %v303_v59, %s3005_s20 }
  0x8d   :  { %v346_v60 = vpop.permute.xlu1 %345 }
  0x91   :  { %v348_v61 = vpop.permute.xlu1 %347 }
  0x92   :  { %v3249_v37 = vsel %vm351_vm2, %v346_v60, %v348_v61 }
  0x95   :  { %v383_v62 = vpop.permute.xlu1 %382 }
  0x96   :  { %v3199_v63 = vmul.f32 0.0, %v383_v62  ;;  %v3201_v0 = vpop.permute.xlu0 %186 }
  0x98   :  { %633 = vrot.lane.b32.xlu0 %v3199_v63, %s3006_s9 }
  0x99   :  { %v387_v2 = vpop.permute.xlu1 %386 }
  0x9a   :  { %v344_v3 = vpop.permute.xlu0 %343 }
  0x9b   :  { %v3205_v4 = vmul.f32 0.0, %v344_v3  ;;  %v3246_v36 = vsel %vm351_vm2, %v344_v3, %v346_v60 }
  0x9d   :  { %v422_v5 = vpop.permute.xlu1 %421  ;;  %609 = vrot.lane.b32.xlu1 %v3205_v4, %s3000_s27 }
  0x9e   :  { %v3207_v6 = vmul.f32 0.0, %v422_v5  ;;  %v3211_v7 = vpop.permute.xlu0 %349 }
  0x9f   :  { %4381 = vst [vmem:[#allocation9_spill] sm:$0xff] %v3211_v7  ;;  %v3259_v42 = vsel %vm351_vm2, %v348_v61, %v3211_v7 }
  0xa1   :  { %658 = vrot.lane.b32.xlu1 %v3207_v6, %s2998_s19  ;;  %v426_v21 = vpop.permute.xlu1 %425 }
  0xa2   :  { %v385_v8 = vpop.permute.xlu0 %384 }
  0xa3   :  { %v3253_v39 = vsel %vm390_vm3, %v383_v62, %v385_v8  ;;  %v3255_v40 = vsel %vm390_vm3, %v385_v8, %v387_v2 }
  0xa5   :  { %v3231_v22 = vpop.permute.xlu1 %465 }
  0xa6   :  { %v3215_v9 = vpop.permute.xlu0 %388 }
  0xa7   :  { %4382 = vst [vmem:[#allocation10_spill] sm:$0xff] %v3215_v9  ;;  %v3262_v43 = vsel %vm390_vm3, %v387_v2, %v3215_v9 }
  0xa8   :  { %4386 = vst [vmem:[#allocation14_spill] sm:$0xff] %v3262_v43 }
  0xa9   :  { %v470_v23 = vpop.permute.xlu1 %469 }
  0xaa   :  { %v424_v10 = vpop.permute.xlu0 %423 }
  0xab   :  { %v3265_v44 = vsel %vm429_vm4, %v422_v5, %v424_v10  ;;  %v3268_v45 = vsel %vm429_vm4, %v424_v10, %v426_v21 }
  0xad   :  { %v3233_v24 = vpop.permute.xlu1 %504 }
  0xae   :  { %v3217_v11 = vpop.permute.xlu0 %427 }
  0xaf   :  { %4383 = vst [vmem:[#allocation11_spill] sm:$0xff] %v3217_v11  ;;  %v3276_v48 = vsel %vm429_vm4, %v426_v21, %v3217_v11 }
  0xb0   :  { %4387 = vst [vmem:[#allocation15_spill] sm:$0xff] %v3276_v48 }
  0xb1   :  { %v509_v25 = vpop.permute.xlu1 %508 }
  0xb2   :  { %v468_v12 = vpop.permute.xlu0 %467 }
  0xb3   :  { %v3272_v46 = vsel %vm473_vm5, %v3231_v22, %v468_v12  ;;  %v3279_v49 = vsel %vm473_vm5, %v468_v12, %v470_v23 }
  0xb4   :  { %4388 = vst [vmem:[#allocation16_spill] sm:$0xff] %v3279_v49 }
  0xb5   :  { %v3235_v26 = vpop.permute.xlu1 %543 }
  0xb6   :  { %v472_v13 = vpop.permute.xlu0 %471  ;;  %4384 = vst [vmem:[#allocation12_spill] sm:$0xff] %v3235_v26 }
  0xb7   :  { %v3219_v14 = vmul.f32 0.0, %v472_v13  ;;  %v3282_v50 = vsel %vm473_vm5, %v470_v23, %v472_v13 }
  0xb8   :  { %4389 = vst [vmem:[#allocation17_spill] sm:$0xff] %v3282_v50 }
  0xb9   :  { %710 = vrot.lane.b32.xlu0 %v3219_v14, %s3007_s21  ;;  %v548_v27 = vpop.permute.xlu1 %547 }
  0xba   :  { %v507_v15 = vpop.permute.xlu0 %506 }
  0xbb   :  { %v3286_v51 = vsel %vm512_vm6, %v3233_v24, %v507_v15  ;;  %v3290_v55 = vsel %vm512_vm6, %v507_v15, %v509_v25 }
  0xbc   :  { %4390 = vst [vmem:[#allocation18_spill] sm:$0xff] %v3286_v51  ;;  %4391 = vst [vmem:[#allocation19_spill] sm:$0xff] %v3290_v55 }
  0xbd   :  { %v3251_v38 = vpop.permute.xlu1 %582 }
  0xbe   :  { %v511_v16 = vpop.permute.xlu0 %510  ;;  %4385 = vst [vmem:[#allocation13_spill] sm:$0xff] %v3251_v38 }
  0xbf   :  { %v3223_v17 = vmul.f32 0.0, %v511_v16  ;;  %v3293_v56 = vsel %vm512_vm6, %v509_v25, %v511_v16 }
  0xc0   :  { %4392 = vst [vmem:[#allocation20_spill] sm:$0xff] %v3293_v56 }
  0xc1   :  { %735 = vrot.lane.b32.xlu1 %v3223_v17, %s2995_s23  ;;  %v587_v13 = vpop.permute.xlu1 %586 }
  0xc2   :  { %v546_v18 = vpop.permute.xlu0 %545 }
  0xc3   :  { %v3299_v61 = vsel %vm551_vm7, %v3235_v26, %v546_v18  ;;  %v3302_v62 = vsel %vm551_vm7, %v546_v18, %v548_v27 }
  0xc4   :  { %4393 = vst [vmem:[#allocation21_spill] sm:$0xff] %v3299_v61  ;;  %4394 = vst [vmem:[#allocation22_spill] sm:$0xff] %v3302_v62 }
  0xc6   :  { %v550_v19 = vpop.permute.xlu0 %549 }
  0xc7   :  { %v3227_v20 = vmul.f32 0.0, %v550_v19  ;;  %v3308_v10 = vsel %vm551_vm7, %v548_v27, %v550_v19 }
  0xc8   :  { %4395 = vst [vmem:[#allocation23_spill] sm:$0xff] %v3308_v10 }
  0xc9   :  { %760 = vrot.lane.b32.xlu0 %v3227_v20, %s3008_s22 }
  0xca   :  { %v585_v41 = vpop.permute.xlu0 %584 }
  0xcb   :  { %v3312_v12 = vsel %vm590_vm8, %v3251_v38, %v585_v41  ;;  %v3319_v21 = vsel %vm590_vm8, %v585_v41, %v587_v13 }
  0xcc   :  { %4396 = vst [vmem:[#allocation24_spill] sm:$0xff] %v3312_v12  ;;  %4397 = vst [vmem:[#allocation25_spill] sm:$0xff] %v3319_v21 }
  0xce   :  { %v589_v23 = vpop.permute.xlu0 %588 }
  0xcf   :  { %v3328_v27 = vsel %vm590_vm8, %v587_v13, %v589_v23 }
  0xd0   :  { %4398 = vst [vmem:[#allocation26_spill] sm:$0xff] %v3328_v27 }
  0xee   :  { %v3237_v28 = vpop.f32.mrb[0].mxu0 }
  0xef   :  { %v3239_v29 = vpop.f32.mrb[0].mxu1  ;;  %v3241_v30 = vpop.f32.mrb[1].mxu0 }
  0xf0   :  { %v3243_v31 = vpop.f32.mrb[1].mxu1  ;;  %v138_v32 = vpop.f32.mrb[2].mxu0 }
  0xf1   :  { %v179_v33 = vpop.f32.mrb[2].mxu1  ;;  %v139_v34 = vpop.f32.mrb[3].mxu0 }
  0xf2   :  { %v180_v35 = vpop.f32.mrb[3].mxu1 }
  0xf6   :  { %v226_v47 = vpop.f32.mrb[4].mxu0 }
  0xf7   :  { %v227_v52 = vadd.f32 %v226_v47, %v3201_v0  ;;  %v267_v53 = vpop.f32.mrb[4].mxu1  ;;  %v228_v54 = vpop.f32.mrb[5].mxu0 }
  0xf8   :  { %v268_v57 = vadd.f32 %v267_v53, %v3201_v0  ;;  %v229_v58 = vadd.f32 %v228_v54, %v3201_v0  ;;  %v269_v59 = vpop.f32.mrb[5].mxu1  ;;  %v230_v60 = vpop.f32.mrb[6].mxu0 }
  0xf9   :  { %v3304_v2 = vmax.f32 %v227_v52, 0.0  ;;  %v270_v3 = vadd.f32 %v269_v59, %v3201_v0  ;;  %v271_v5 = vpop.f32.mrb[6].mxu1  ;;  %v231_v8 = vpop.f32.mrb[7].mxu0 }
  0xfa   :  { %v3314_v15 = vmax.f32 %v268_v57, 0.0  ;;  %v3316_v16 = vmax.f32 %v229_v58, 0.0  ;;  %v272_v18 = vpop.f32.mrb[7].mxu1 }
  0xfb   :  { %v3321_v0 = vmax.f32 %v270_v3, 0.0  ;;  %v361_v19 = vmul.f32 %v3246_v36, %v3304_v2  ;;  %v400_v25 = vmul.f32 %v3253_v39, %v3304_v2  ;;  %v439_v34 = vmul.f32 %v3265_v44, %v3304_v2 }
  0xfc   :  { %v2705_v32 = vpack.i.bf16 %v3316_v16, %v3304_v2  ;;  %v363_v33 = vmul.f32 %v3259_v42, %v3314_v15  ;;  %v362_v47 = vmul.f32 %v3249_v37, %v3316_v16  ;;  %v401_v52 = vmul.f32 %v3255_v40, %v3316_v16 }
  0xfd   :  { %v2710_v35 = vpack.i.bf16 %v3321_v0, %v3314_v15  ;;  %v364_v41 = vmul.f32 %v3211_v7, %v3321_v0  ;;  %v402_v53 = vmul.f32 %v3262_v43, %v3314_v15  ;;  %v403_v54 = vmul.f32 %v3215_v9, %v3321_v0 }
  0xfe   :  { %2706 = vrot.lane.b32.xlu0 %v2705_v32, %s3005_s20  ;;  %v440_v57 = vmul.f32 %v3268_v45, %v3316_v16  ;;  %v441_v58 = vmul.f32 %v3276_v48, %v3314_v15  ;;  %v2715_v60 = vpack.i.bf16 %v362_v47, %v361_v19  ;;  %v2725_v3 = vpack.i.bf16 %v401_v52, %v400_v25 }
  0xff   :  { %2711 = vrot.lane.b32.xlu1 %v2710_v35, %s3005_s20  ;;  %v2720_v59 = vpack.i.bf16 %v364_v41, %v363_v33  ;;  %v442_v5 = vmul.f32 %v3217_v11, %v3321_v0  ;;  %v2730_v8 = vpack.i.bf16 %v403_v54, %v402_v53  ;;  %v482_v18 = vmul.f32 %v3231_v22, %v3304_v2 }
 0x100   :  { %v2735_v13 = vpack.i.bf16 %v440_v57, %v439_v34  ;;  %v483_v32 = vmul.f32 %v3272_v46, %v3316_v16  ;;  %v484_v9 = vmul.f32 %v3279_v49, %v3314_v15  ;;  %v485_v33 = vmul.f32 %v3282_v50, %v3321_v0 }
 0x101   :  { %v2740_v1 = vpack.i.bf16 %v442_v5, %v441_v58  ;;  %v523_v19 = vmul.f32 %v3290_v55, %v3314_v15  ;;  %v524_v34 = vmul.f32 %v3293_v56, %v3321_v0  ;;  %v521_v35 = vmul.f32 %v3233_v24, %v3304_v2 }
 0x102   :  { %2721 = vrot.lane.b32.xlu0 %v2720_v59, %s3000_s27  ;;  %v2745_v25 = vpack.i.bf16 %v483_v32, %v482_v18  ;;  %v522_v41 = vmul.f32 %v3286_v51, %v3316_v16  ;;  %v2750_v47 = vpack.i.bf16 %v485_v33, %v484_v9  ;;  %v560_v52 = vmul.f32 %v3235_v26, %v3304_v2 }
 0x103   :  { %2716 = vrot.lane.b32.xlu1 %v2715_v60, %s3000_s27  ;;  %v561_v53 = vmul.f32 %v3299_v61, %v3316_v16  ;;  %v562_v54 = vmul.f32 %v3302_v62, %v3314_v15  ;;  %v2760_v57 = vpack.i.bf16 %v524_v34, %v523_v19  ;;  %v563_v59 = vmul.f32 %v3308_v10, %v3321_v0 }
 0x104   :  { %v2755_v58 = vpack.i.bf16 %v522_v41, %v521_v35  ;;  %v601_v5 = vmul.f32 %v3319_v21, %v3314_v15  ;;  %v602_v9 = vmul.f32 %v3328_v27, %v3321_v0  ;;  %v599_v60 = vmul.f32 %v3251_v38, %v3304_v2 }
 0x105   :  { %v2765_v18 = vpack.i.bf16 %v561_v53, %v560_v52  ;;  %v600_v32 = vmul.f32 %v3312_v12, %v3316_v16  ;;  %v2770_v33 = vpack.i.bf16 %v563_v59, %v562_v54 }
 0x106   :  { %2726 = vrot.lane.b32.xlu0 %v2725_v3, %s3006_s9  ;;  %v2780_v19 = vpack.i.bf16 %v602_v9, %v601_v5  ;;  %v3401_v3 = vmul.f32 0.0, %v589_v23 }
 0x107   :  { %2731 = vrot.lane.b32.xlu1 %v2730_v8, %s3006_s9  ;;  %v2775_v34 = vpack.i.bf16 %v600_v32, %v599_v60  ;;  %v305_v8 = vpop.permute.xlu1 %304 }
 0x108   :  { %4399 = vst [vmem:[#allocation27_spill] sm:$0xff] %v3401_v3 }
 0x10a   :  { %2736 = vrot.lane.b32.xlu0 %v2735_v13, %s2998_s19 }
 0x10b   :  { %2741 = vrot.lane.b32.xlu1 %v2740_v1, %s2998_s19  ;;  %v3406_v1 = vpop.permute.xlu0 %306 }
 0x10e   :  { %2746 = vrot.lane.b32.xlu0 %v2745_v25, %s3007_s21  ;;  %v3410_v25 = vpop.permute.xlu1 %308 }
 0x10f   :  { %2751 = vrot.lane.b32.xlu1 %v2750_v47, %s3007_s21  ;;  %v3408_v13 = vpop.permute.xlu0 %310  ;;  %v3479_v7 = vsel %vm312_vm9, %v3406_v1, %v3410_v25 }
 0x110   :  { %4400 = vst [vmem:[#allocation28_spill] sm:$0xff] %v3408_v13  ;;  %v323_v48 = vmul.f32 %v3479_v7, %v3316_v16 }
 0x112   :  { %2761 = vrot.lane.b32.xlu0 %v2760_v57, %s2995_s23  ;;  %v610_v41 = vpop.permute.xlu1 %609 }
 0x113   :  { %2756 = vrot.lane.b32.xlu1 %v2755_v58, %s2995_s23  ;;  %v634_v35 = vpop.permute.xlu0 %633 }
 0x116   :  { %2766 = vrot.lane.b32.xlu0 %v2765_v18, %s3008_s22  ;;  %v659_v52 = vpop.permute.xlu1 %658 }
 0x117   :  { %2771 = vrot.lane.b32.xlu1 %v2770_v33, %s3008_s22 }
 0x11a   :  { %2781 = vrot.lane.b32.xlu0 %v2780_v19, %s3009_s24 }
 0x11b   :  { %2776 = vrot.lane.b32.xlu1 %v2775_v34, %s3009_s24 }
 0x11f   :  { %785 = vrot.lane.b32.xlu1 %v3401_v3, %s3009_s24 }
 0x12b   :  { %v3412_v47 = vpop.permute.xlu0 %710 }
 0x133   :  { %v3416_v23 = vpop.permute.xlu1 %735 }
 0x13b   :  { %v3414_v53 = vpop.permute.xlu0 %760 }
 0x170   :  { %v3418_v54 = vpop.permute.xlu0 %2706 }
 0x171   :  { %v3420_v57 = vpop.permute.xlu1 %2711  ;;  %v4350_v33 = vunpack.i.l.bf16 %v3418_v54 }
 0x174   :  { %v3422_v58 = vpop.permute.xlu0 %2721 }
 0x175   :  { %v2717_v59 = vpop.permute.xlu1 %2716  ;;  %v2724_v61 = vunpack.i.h.bf16 %v3422_v58 }
 0x176   :  { %v2718_v26 = vunpack.i.l.bf16 %v2717_v59 }
 0x178   :  { %v3424_v5 = vpop.permute.xlu0 %2726 }
 0x179   :  { %v3426_v18 = vpop.permute.xlu1 %2731  ;;  %v2728_v56 = vunpack.i.l.bf16 %v3424_v5  ;;  %v2729_v43 = vunpack.i.h.bf16 %v3424_v5 }
 0x17a   :  { %v2733_v5 = vunpack.i.l.bf16 %v3426_v18 }
 0x17c   :  { %v3428_v9 = vpop.permute.xlu0 %2736 }
 0x17d   :  { %v3430_v60 = vpop.permute.xlu1 %2741 }
 0x180   :  { %v3432_v32 = vpop.permute.xlu0 %2746 }
 0x181   :  { %v4351_v19 = vunpack.i.l.bf16 %v3432_v32  ;;  %v3436_v34 = vpop.permute.xlu1 %2751 }
 0x183   :  { %v807_v3 = vpack.c.bf16 %v4351_v19, %v4350_v33  ;;  %v2738_v19 = vunpack.i.l.bf16 %v3428_v9 }
 0x184   :  { %v3442_v12 = vpop.permute.xlu0 %2761 }
 0x185   :  { %v3444_v38 = vpop.permute.xlu1 %2756  ;;  %874 = vrot.lane.b32.xlu0 %v807_v3, %s3004_s0  ;;  %v325_v3 = vmul.f32 %v3408_v13, %v3321_v0  ;;  %v668_v11 = vsel %vm351_vm2, %v659_v52, %v2738_v19  ;;  %v619_v0 = vsel %vm429_vm4, %v610_v41, %v2718_v26  ;;  %v2744_v52 = vunpack.i.h.bf16 %v3430_v60 }
 0x186   :  { %v4362_v21 = vunpack.i.l.bf16 %v3444_v38 }
 0x187   :  { %v801_v50 = vpack.c.bf16 %v2724_v61, %v325_v3  ;;  %v2739_v3 = vunpack.i.h.bf16 %v3428_v9  ;;  %v2743_v9 = vunpack.i.l.bf16 %v3430_v60  ;;  %v2749_v60 = vunpack.i.h.bf16 %v3432_v32 }
 0x188   :  { %v3447_v27 = vpop.permute.xlu0 %2766 }
 0x189   :  { %v4363_v10 = vunpack.i.l.bf16 %v3447_v27  ;;  %v3451_v62 = vpop.permute.xlu1 %2771 }
 0x18b   :  { %v812_v33 = vpack.c.bf16 %v4363_v10, %v4362_v21  ;;  %v2723_v21 = vunpack.i.l.bf16 %v3422_v58  ;;  %v2719_v10 = vunpack.i.h.bf16 %v2717_v59  ;;  %v644_v58 = vsel %vm643_vm10, %v634_v35, %v2728_v56 }
 0x18c   :  { %v802_v59 = vpack.c.bf16 %v668_v11, %v644_v58  ;;  %v3495_v11 = vsel %vm312_vm9, %v305_v8, %v3406_v1  ;;  %v669_v58 = vsel %vm351_vm2, %v2738_v19, %v2739_v3  ;;  %v2753_v19 = vunpack.i.l.bf16 %v3436_v34 }
 0x18d   :  { %v3459_v51 = vpop.permute.xlu1 %2776  ;;  %884 = vrot.lane.b32.xlu1 %v812_v33, %s3004_s0  ;;  %v3474_v33 = vmul.f32 0.0, %v305_v8  ;;  %v621_v41 = vsel %vm429_vm4, %v2719_v10, %v2723_v21  ;;  %v620_v16 = vsel %vm429_vm4, %v2718_v26, %v2719_v10  ;;  %v322_v1 = vmul.f32 %v3495_v11, %v3304_v2 }
 0x18e   :  { %v3466_v55 = vunpack.i.l.bf16 %v3459_v51  ;;  %v799_v35 = vpack.c.bf16 %v621_v41, %v323_v48  ;;  %v3509_v48 = vsel %vm312_vm9, %v3410_v25, %v3408_v13  ;;  %v671_v10 = vsel %vm351_vm2, %v2743_v9, %v2744_v52 }
 0x18f   :  { %v798_v26 = vpack.c.bf16 %v620_v16, %v322_v1  ;;  %v324_v2 = vmul.f32 %v3509_v48, %v3314_v15  ;;  %v2713_v25 = vunpack.i.l.bf16 %v3420_v57  ;;  %v2769_v16 = vunpack.i.h.bf16 %v3447_v27 }
 0x190   :  { %v817_v49 = vpack.c.bf16 %v3466_v55, %v3466_v55  ;;  %v4401_v1 = vunpack.i.l.bf16 %v3432_v32  ;;  %v4403_v32 = vunpack.i.l.bf16 %v3447_v27  ;;  %v2779_v27 = vunpack.i.h.bf16 %v3459_v51 }
 0x191   :  { %862 = vrot.lane.b32.xlu1 %v801_v50, %s3004_s0  ;;  %v797_v50 = vpack.c.bf16 %v619_v0, %v3474_v33 }
 0x192   :  { %894 = vrot.lane.b32.xlu0 %v817_v49, %s3004_s0  ;;  %v2734_v49 = vunpack.i.h.bf16 %v3426_v18  ;;  %v2709_v18 = vunpack.i.h.bf16 %v3418_v54  ;;  %v788_v51 = vsel %vm787_vm14, %v3466_v55, %v2779_v27 }
 0x194   :  { %v806_v0 = vpack.c.bf16 %v2744_v52, %v2734_v49  ;;  %v690_v15 = vsel %vm312_vm9, %v2709_v18, %v2713_v25 }
 0x195   :  { %864 = vrot.lane.b32.xlu1 %v802_v59, %s3004_s0  ;;  %v645_v59 = vsel %vm643_vm10, %v2728_v56, %v2729_v43  ;;  %v622_v56 = vsel %vm429_vm4, %v2723_v21, %v2724_v61  ;;  %v670_v61 = vsel %vm351_vm2, %v2739_v3, %v2743_v9  ;;  %v646_v21 = vsel %vm643_vm10, %v2729_v43, %v2733_v5 }
 0x196   :  { %854 = vrot.lane.b32.xlu0 %v797_v50, %s3004_s0  ;;  %v803_v8 = vpack.c.bf16 %v669_v58, %v645_v59  ;;  %v647_v50 = vsel %vm643_vm10, %v2733_v5, %v2734_v49  ;;  %v800_v52 = vpack.c.bf16 %v622_v56, %v324_v2  ;;  %v804_v49 = vpack.c.bf16 %v670_v61, %v646_v21 }
 0x197   :  { %v805_v41 = vpack.c.bf16 %v671_v10, %v647_v50  ;;  %v2714_v59 = vunpack.i.h.bf16 %v3420_v57  ;;  %v713_v3 = vsel %vm712_vm11, %v4401_v1, %v2749_v60  ;;  %v2759_v9 = vunpack.i.h.bf16 %v3444_v38  ;;  %v786_v1 = vpop.permute.xlu1 %785 }
 0x198   :  { %v4402_v43 = vunpack.i.l.bf16 %v3418_v54  ;;  %v2773_v57 = vunpack.i.l.bf16 %v3451_v62  ;;  %v2764_v56 = vunpack.i.h.bf16 %v3442_v12  ;;  %v2763_v54 = vunpack.i.l.bf16 %v3442_v12 }
 0x199   :  { %858 = vrot.lane.b32.xlu1 %v799_v35, %s3004_s0  ;;  %v2754_v35 = vunpack.i.h.bf16 %v3436_v34  ;;  %v4404_v2 = vunpack.i.l.bf16 %v3444_v38 }
 0x19a   :  { %872 = vrot.lane.b32.xlu0 %v806_v0, %s3004_s0  ;;  %v714_v0 = vsel %vm712_vm11, %v2749_v60, %v2753_v19  ;;  %v689_v5 = vsel %vm312_vm9, %v4402_v43, %v2709_v18  ;;  %v763_v60 = vsel %vm762_vm12, %v4403_v32, %v2769_v16  ;;  %v764_v12 = vsel %vm762_vm12, %v2769_v16, %v2773_v57  ;;  %v77_v43 = vld [vmem:[%s4327_s8] sm:$0xff] }
 0x19b   :  { %v809_v58 = vpack.c.bf16 %v714_v0, %v690_v15  ;;  %v716_v34 = vsel %vm712_vm11, %v2754_v35, %v3412_v47  ;;  %v2774_v47 = vunpack.i.h.bf16 %v3451_v62  ;;  %v715_v10 = vsel %vm712_vm11, %v2753_v19, %v2754_v35  ;;  %v2782_v0 = vpop.permute.xlu0 %2781 }
 0x19c   :  { %v738_v18 = vsel %vm737_vm13, %v4404_v2, %v2759_v9  ;;  %v691_v62 = vsel %vm312_vm9, %v2713_v25, %v2714_v59  ;;  %v740_v38 = vsel %vm737_vm13, %v2763_v54, %v2764_v56  ;;  %v739_v19 = vsel %vm737_vm13, %v2759_v9, %v2763_v54 }
 0x19d   :  { %866 = vrot.lane.b32.xlu1 %v803_v8, %s3004_s0  ;;  %v811_v8 = vpack.c.bf16 %v716_v34, %v2714_v59  ;;  %v813_v50 = vpack.c.bf16 %v763_v60, %v738_v18  ;;  %v2784_v25 = vunpack.i.h.bf16 %v2782_v0  ;;  %v2783_v61 = vunpack.i.l.bf16 %v2782_v0 }
 0x19e   :  { %856 = vrot.lane.b32.xlu0 %v798_v26, %s3004_s0  ;;  %v808_v26 = vpack.c.bf16 %v713_v3, %v689_v5  ;;  %v814_v15 = vpack.c.bf16 %v764_v12, %v739_v19  ;;  %v766_v21 = vsel %vm762_vm12, %v2774_v47, %v3414_v53  ;;  %v818_v16 = vpack.c.bf16 %v788_v51, %v788_v51  ;;  %v1048_v5 = vld [vmem:[%s4325_s6] sm:$0xff] }
 0x19f   :  { %v790_v34 = vsel %vm787_vm14, %v2783_v61, %v2784_v25  ;;  %v789_v59 = vsel %vm787_vm14, %v2779_v27, %v2783_v61  ;;  %v791_v53 = vsel %vm787_vm14, %v2784_v25, %v786_v1 }
 0x1a0   :  { %v820_v55 = vpack.c.bf16 %v790_v34, %v790_v34  ;;  %v819_v3 = vpack.c.bf16 %v789_v59, %v789_v59  ;;  %v821_v9 = vpack.c.bf16 %v791_v53, %v791_v53 }
 0x1a1   :  { %870 = vrot.lane.b32.xlu1 %v805_v41, %s3004_s0  ;;  %v810_v41 = vpack.c.bf16 %v715_v10, %v691_v62 }
 0x1a2   :  { %860 = vrot.lane.b32.xlu0 %v800_v52, %s3004_s0  ;;  %v765_v52 = vsel %vm762_vm12, %v2773_v57, %v2774_v47 }
 0x1a3   :  { %v815_v35 = vpack.c.bf16 %v765_v52, %v740_v38 }
 0x1a5   :  { %878 = vrot.lane.b32.xlu1 %v809_v58, %s3004_s0  ;;  %v741_v58 = vsel %vm737_vm13, %v2764_v56, %v3416_v23  ;;  %v823_v23 = vld [vmem:[%s4323_s4] sm:$0xff] }
 0x1a6   :  { %868 = vrot.lane.b32.xlu0 %v804_v49, %s3004_s0  ;;  %v816_v49 = vpack.c.bf16 %v766_v21, %v741_v58 }
 0x1a9   :  { %882 = vrot.lane.b32.xlu1 %v811_v8, %s3004_s0  ;;  %v2654_v8 = vld [vmem:[%s4321_s2 + $0x8] sm:$0xff] }
 0x1aa   :  { %876 = vrot.lane.b32.xlu0 %v808_v26, %s3004_s0 }
 0x1ad   :  { %886 = vrot.lane.b32.xlu1 %v813_v50, %s3004_s0 }
 0x1ae   :  { %880 = vrot.lane.b32.xlu0 %v810_v41, %s3004_s0 }
 0x1b1   :  { %890 = vrot.lane.b32.xlu1 %v815_v35, %s3004_s0 }
 0x1b2   :  { %888 = vrot.lane.b32.xlu0 %v814_v15, %s3004_s0 }
 0x1b5   :  { %896 = vrot.lane.b32.xlu1 %v818_v16, %s3004_s0 }
 0x1b6   :  { %892 = vrot.lane.b32.xlu0 %v816_v49, %s3004_s0 }
 0x1b9   :  { %900 = vrot.lane.b32.xlu1 %v820_v55, %s3004_s0 }
 0x1ba   :  { %898 = vrot.lane.b32.xlu0 %v819_v3, %s3004_s0 }
 0x1bd   :  { %826 = vperm.xlu1 %2785, %v823_v23  }
 0x1be   :  { %902 = vrot.lane.b32.xlu0 %v821_v9, %s3004_s0 }
 0x1c1   :  { %80 = vperm.xlu1 %2785, %v77_v43  }
 0x1c2   :  { %1051 = vperm.xlu0 %2704, %v1048_v5  }
 0x1c5   :  { %1336 = vrot.lane.b32.xlu1 %v3205_v4, %s3000_s27 }
 0x1c6   :  { %1173 = vperm.xlu0 %2704, %v2654_v8  }
 0x1c9   :  { %1384 = vrot.lane.b32.xlu1 %v3207_v6, %s2998_s19 }
 0x1ca   :  { %1360 = vrot.lane.b32.xlu0 %v3199_v63, %s3006_s9 }
 0x1cd   :  { %1460 = vrot.lane.b32.xlu1 %v3223_v17, %s2995_s23 }
 0x1ce   :  { %1436 = vrot.lane.b32.xlu0 %v3219_v14, %s3007_s21 }
 0x1d2   :  { %1484 = vrot.lane.b32.xlu0 %v3227_v20, %s3008_s22 }
 0x1f7   :  { %v875_v57 = vpop.permute.xlu0 %874 }
 0x1ff   :  { %v885_v47 = vpop.permute.xlu1 %884 }
 0x203   :  { %v863_v26 = vpop.permute.xlu1 %862 }
 0x204   :  { %v895_v32 = vpop.permute.xlu0 %894 }
 0x207   :  { %v865_v60 = vpop.permute.xlu1 %864 }
 0x208   :  { %v855_v10 = vpop.permute.xlu0 %854 }
 0x20b   :  { %v859_v56 = vpop.permute.xlu1 %858 }
 0x20c   :  { %v873_v54 = vpop.permute.xlu0 %872 }
 0x20f   :  { %v867_v2 = vpop.permute.xlu1 %866 }
 0x210   :  { %v857_v18 = vpop.permute.xlu0 %856  ;;  %v909_v61 = vsel %vm590_vm8, %v865_v60, %v867_v2 }
 0x211   :  { %v906_v62 = vsel %vm590_vm8, %v857_v18, %v859_v56  ;;  %v905_v50 = vsel %vm590_vm8, %v855_v10, %v857_v18  ;;  %v4405_v18 = vmov 0  }
 0x212   :  { %957 = vmatprep.subr.bf16.mxu0 %v906_v62 }
 0x213   :  { %958 = vmatpush1.bf16.msra.mxu0 %v905_v50  ;;  %v871_v27 = vpop.permute.xlu1 %870 }
 0x214   :  { %v861_v41 = vpop.permute.xlu0 %860  ;;  %v912_v12 = vsel %vm590_vm8, %v871_v27, %v873_v54 }
 0x215   :  { %v908_v52 = vsel %vm590_vm8, %v861_v41, %v863_v26  ;;  %v907_v0 = vsel %vm590_vm8, %v859_v56, %v861_v41  ;;  %v822_v56 = vld [vmem:[%s4322_s3] sm:$0xf] }
 0x216   :  { %998 = vmatprep.subr.bf16.mxu1 %v908_v52 }
 0x217   :  { %999 = vmatpush1.bf16.msra.mxu1 %v907_v0  ;;  %v879_v38 = vpop.permute.xlu1 %878 }
 0x218   :  { %1000 = vmatprep.subr.bf16.mxu1 %v912_v12  ;;  %v869_v19 = vpop.permute.xlu0 %868 }
 0x219   :  { %v910_v35 = vsel %vm590_vm8, %v867_v2, %v869_v19  ;;  %v911_v25 = vsel %vm590_vm8, %v869_v19, %v871_v27 }
 0x21a   :  { %959 = vmatprep.subr.bf16.mxu0 %v910_v35 }
 0x21b   :  { %960 = vmatpush1.bf16.msra.mxu0 %v909_v61  ;;  %1001 = vmatpush1.bf16.msra.mxu1 %v911_v25  ;;  %v883_v15 = vpop.permute.xlu1 %882 }
 0x21c   :  { %v877_v51 = vpop.permute.xlu0 %876 }
 0x21d   :  { %v914_v21 = vsel %vm590_vm8, %v877_v51, %v879_v38  ;;  %v913_v58 = vsel %vm590_vm8, %v875_v57, %v877_v51 }
 0x21e   :  { %961 = vmatprep.subr.bf16.mxu0 %v914_v21 }
 0x21f   :  { %962 = vmatpush1.bf16.msra.mxu0 %v913_v58  ;;  %v887_v16 = vpop.permute.xlu1 %886 }
 0x220   :  { %v881_v49 = vpop.permute.xlu0 %880  ;;  %v917_v53 = vsel %vm590_vm8, %v885_v47, %v887_v16 }
 0x221   :  { %v916_v34 = vsel %vm590_vm8, %v881_v49, %v883_v15  ;;  %v915_v59 = vsel %vm590_vm8, %v879_v38, %v881_v49 }
 0x222   :  { %1002 = vmatprep.subr.bf16.mxu1 %v916_v34 }
 0x223   :  { %1003 = vmatpush1.bf16.msra.mxu1 %v915_v59  ;;  %v891_v1 = vpop.permute.xlu1 %890 }
 0x224   :  { %v889_v55 = vpop.permute.xlu0 %888 }
 0x225   :  { %v918_v3 = vsel %vm590_vm8, %v887_v16, %v889_v55  ;;  %v919_v5 = vsel %vm590_vm8, %v889_v55, %v891_v1  ;;  %v1043_v55 = vld [vmem:[#allocation3] sm:$0xf] }
 0x226   :  { %963 = vmatprep.subr.bf16.mxu0 %v918_v3 }
 0x227   :  { %964 = vmatpush1.bf16.msra.mxu0 %v917_v53  ;;  %v897_v23 = vpop.permute.xlu1 %896 }
 0x228   :  { %v893_v9 = vpop.permute.xlu0 %892  ;;  %v921_v8 = vsel %vm590_vm8, %v895_v32, %v897_v23 }
 0x229   :  { %v920_v43 = vsel %vm590_vm8, %v891_v1, %v893_v9  ;;  %v946_v10 = vsel %vm87_vm0, %v921_v8, 0 }
 0x22a   :  { %1004 = vmatprep.subr.bf16.mxu1 %v920_v43 }
 0x22b   :  { %1005 = vmatpush1.bf16.msra.mxu1 %v919_v5  ;;  %v901_v26 = vpop.permute.xlu1 %900 }
 0x22c   :  { %v899_v57 = vpop.permute.xlu0 %898 }
 0x22d   :  { %v922_v60 = vsel %vm590_vm8, %v897_v23, %v899_v57  ;;  %v923_v47 = vsel %vm590_vm8, %v899_v57, %v901_v26 }
 0x22e   :  { %2645 = vmatprep.subr.msk.bf16.mxu0 %vm87_vm0, %v922_v60  ;;  %v952_v2 = vsel %vm87_vm0, %v923_v47, 0 }
 0x22f   :  { %966 = vmatpush1.bf16.msra.mxu0 %v946_v10 }
 0x230   :  { %v903_v54 = vpop.permute.xlu0 %902 }
 0x231   :  { %v924_v32 = vsel %vm590_vm8, %v901_v26, %v903_v54 }
 0x232   :  { %2646 = vmatmul.mubr.msk.bf16.vlgmr.msra.gmra.mrb[8].mxu0 %vm941_vm15, %v822_v56  ;;  %2647 = vmatprep.subr.msk.bf16.mxu1 %vm87_vm0, %v924_v32 }
 0x233   :  { %1007 = vmatpush1.bf16.msra.mxu1 %v952_v2  ;;  %1101 = vmatprep.mubr.bf16.mxu0 %v4405_v18 }
 0x236   :  { %2648 = vmatmul.mubr.msk.bf16.vlgmr.msra.gmra.mrb[8].mxu1 %vm941_vm15, %v822_v56 }
 0x237   :  { %1142 = vmatprep.mubr.bf16.mxu1 %v4405_v18 }
 0x23c   :  { %v827_v62 = vpop.permute.xlu1 %826 }
 0x240   :  { %v81_v23 = vpop.permute.xlu1 %80 }
 0x241   :  { %v1052_v9 = vpop.permute.xlu0 %1051  ;;  %v135_v60 = vadd.f32 %v3237_v28, %v81_v23  ;;  %v137_v56 = vadd.f32 %v3241_v30, %v81_v23  ;;  %v178_v28 = vadd.f32 %v3243_v31, %v81_v23  ;;  %v2653_v31 = vld [vmem:[%s4320_s1 + $0x4] sm:$0xf] }
 0x305   :  { %v991_v50 = vpop.f32.mrb[8].mxu0 }
 0x306   :  { %v992_v27 = vadd.f32 %v991_v50, %v827_v62  ;;  %v993_v41 = vpop.f32.mrb[9].mxu0 }
 0x307   :  { %v994_v52 = vadd.f32 %v993_v41, %v827_v62  ;;  %v995_v0 = vpop.f32.mrb[10].mxu0 }
 0x308   :  { %v1039_v12 = vmax.f32 %v992_v27, 0.0  ;;  %v996_v38 = vpop.f32.mrb[11].mxu0 }
 0x309   :  { %v1040_v19 = vmax.f32 %v994_v52, 0.0  ;;  %v1032_v35 = vpop.f32.mrb[8].mxu1 }
 0x30a   :  { %v1044_v25 = vpack.c.bf16 %v1039_v12, %v1039_v12  ;;  %v1033_v61 = vadd.f32 %v1032_v35, %v827_v62  ;;  %v1034_v15 = vpop.f32.mrb[9].mxu1  ;;  %v176_v12 = vadd.f32 %v3239_v29, %v81_v23 }
 0x30b   :  { %v1045_v51 = vpack.c.bf16 %v1040_v19, %v1040_v19  ;;  %v1035_v21 = vadd.f32 %v1034_v15, %v827_v62  ;;  %v1036_v58 = vpop.f32.mrb[10].mxu1 }
 0x30c   :  { %v1041_v16 = vmax.f32 %v1033_v61, 0.0  ;;  %v1037_v49 = vpop.f32.mrb[11].mxu1  ;;  %v1058_v34 = vsel %vm87_vm0, %v1044_v25, 0 }
 0x30d   :  { %v1042_v59 = vmax.f32 %v1035_v21, 0.0  ;;  %2649 = vmatprep.subr.msk.bf16.mxu0 %vm87_vm0, %v1045_v51 }
 0x30e   :  { %v1046_v1 = vpack.c.bf16 %v1041_v16, %v1041_v16  ;;  %1070 = vmatpush1.bf16.msra.mxu0 %v1058_v34 }
 0x30f   :  { %v1047_v3 = vpack.c.bf16 %v1042_v59, %v1042_v59  ;;  %v1174_v59 = vpop.permute.xlu0 %1173 }
 0x310   :  { %v1064_v53 = vsel %vm87_vm0, %v1046_v1, 0 }
 0x311   :  { %2650 = vmatmul.mubr.msk.bf16.vlgmr.msra.gmra.mrb[12].mxu0 %vm83_vm1, %v1043_v55  ;;  %2651 = vmatprep.subr.msk.bf16.mxu1 %vm87_vm0, %v1047_v3 }
 0x312   :  { %1111 = vmatpush1.bf16.msra.mxu1 %v1064_v53  ;;  %1223 = vmatprep.mubr.bf16.mxu0 %v4405_v18 }
 0x315   :  { %2652 = vmatmul.mubr.msk.bf16.vlgmr.msra.gmra.mrb[12].mxu1 %vm83_vm1, %v1043_v55 }
 0x316   :  { %1264 = vmatprep.mubr.bf16.mxu1 %v4405_v18 }
 0x3e4   :  { %v1103_v43 = vpop.f32.mrb[12].mxu0 }
 0x3e5   :  { %v1104_v5 = vadd.f32 %v1103_v43, %v1052_v9  ;;  %v1105_v8 = vpop.f32.mrb[13].mxu0 }
 0x3e6   :  { %v1106_v57 = vadd.f32 %v1105_v8, %v1052_v9  ;;  %v1107_v26 = vpop.f32.mrb[14].mxu0 }
 0x3e7   :  { %v1151_v10 = vmax.f32 %v1104_v5, 0.0  ;;  %v1108_v47 = vpop.f32.mrb[15].mxu0 }
 0x3e8   :  { %v1152_v54 = vmax.f32 %v1106_v57, 0.0  ;;  %v1144_v32 = vpop.f32.mrb[12].mxu1 }
 0x3e9   :  { %v1155_v2 = vadd.f32 %v1151_v10, %v135_v60  ;;  %v1145_v62 = vadd.f32 %v1144_v32, %v1052_v9  ;;  %v1146_v50 = vpop.f32.mrb[13].mxu1 }
 0x3ea   :  { %v1156_v27 = vadd.f32 %v1152_v54, %v137_v56  ;;  %v1147_v41 = vadd.f32 %v1146_v50, %v1052_v9  ;;  %v1148_v52 = vpop.f32.mrb[14].mxu1 }
 0x3eb   :  { %v3644_v0 = vmax.f32 %v1155_v2, 0.0  ;;  %v1153_v38 = vmax.f32 %v1145_v62, 0.0  ;;  %v1149_v19 = vpop.f32.mrb[15].mxu1 }
 0x3ec   :  { %v3647_v35 = vmax.f32 %v1156_v27, 0.0  ;;  %v1154_v25 = vmax.f32 %v1147_v41, 0.0 }
 0x3ed   :  { %v1157_v30 = vadd.f32 %v1153_v38, %v176_v12  ;;  %v1163_v61 = vpack.c.bf16 %v3644_v0, %v3644_v0 }
 0x3ee   :  { %v1164_v15 = vpack.c.bf16 %v3647_v35, %v3647_v35  ;;  %v1158_v51 = vadd.f32 %v1154_v25, %v178_v28 }
 0x3ef   :  { %v3654_v21 = vmax.f32 %v1157_v30, 0.0  ;;  %v1180_v58 = vsel %vm87_vm0, %v1163_v61, 0  ;;  %v4406_v61 = vld [vmem:[#allocation14_spill] sm:$0xff] }
 0x3f0   :  { %v3657_v29 = vmax.f32 %v1158_v51, 0.0  ;;  %2655 = vmatprep.subr.msk.bf16.mxu0 %vm87_vm0, %v1164_v15 }
 0x3f1   :  { %1192 = vmatpush1.bf16.msra.mxu0 %v1180_v58  ;;  %v1165_v16 = vpack.c.bf16 %v3654_v21, %v3654_v21  ;;  %v4407_v58 = vld [vmem:[#allocation15_spill] sm:$0xff] }
 0x3f2   :  { %v1166_v49 = vpack.c.bf16 %v3657_v29, %v3657_v29 }
 0x3f3   :  { %v1186_v34 = vsel %vm87_vm0, %v1165_v16, 0 }
 0x3f4   :  { %2656 = vmatmul.mubr.msk.bf16.vlgmr.msra.gmra.mrb[16].mxu0 %vm83_vm1, %v2653_v31  ;;  %2657 = vmatprep.subr.msk.bf16.mxu1 %vm87_vm0, %v1166_v49  ;;  %v4408_v49 = vld [vmem:[#allocation9_spill] sm:$0xff] }
 0x3f5   :  { %1233 = vmatpush1.bf16.msra.mxu1 %v1186_v34  ;;  %1711 = vmatprep.mubr.bf16.mxu0 %v4405_v18 }
 0x3f8   :  { %2658 = vmatmul.mubr.msk.bf16.vlgmr.msra.gmra.mrb[16].mxu1 %vm83_vm1, %v2653_v31 }
 0x3f9   :  { %1752 = vmatprep.mubr.bf16.mxu1 %v4405_v18 }
 0x4c7   :  { %v1225_v1 = vpop.f32.mrb[16].mxu0 }
 0x4c8   :  { %v1226_v55 = vadd.f32 %v1225_v1, %v1174_v59  ;;  %v1227_v3 = vpop.f32.mrb[17].mxu0 }
 0x4c9   :  { %v1228_v53 = vadd.f32 %v1227_v3, %v1174_v59  ;;  %v1229_v23 = vpop.f32.mrb[18].mxu0 }
 0x4ca   :  { %v3673_v9 = vmax.f32 %v1226_v55, 0.0  ;;  %v1230_v43 = vpop.f32.mrb[19].mxu0  ;;  %v4410_v55 = vld [vmem:[#allocation11_spill] sm:$0xff]  ;;  %v4411_v23 = vld [vmem:[#allocation16_spill] sm:$0xff] }
 0x4cb   :  { %v3675_v5 = vmax.f32 %v1228_v53, 0.0  ;;  %v1266_v8 = vpop.f32.mrb[16].mxu1 }
 0x4cc   :  { %v1267_v57 = vadd.f32 %v1266_v8, %v1174_v59  ;;  %v1268_v26 = vpop.f32.mrb[17].mxu1  ;;  %v1292_v60 = vmul.f32 %v3673_v9, %v3246_v36  ;;  %v1297_v10 = vmul.f32 %v3673_v9, %v3253_v39  ;;  %v1302_v47 = vmul.f32 %v3673_v9, %v3265_v44  ;;  %v4412_v8 = vld [vmem:[#allocation17_spill] sm:$0xff] }
 0x4cd   :  { %v1269_v56 = vadd.f32 %v1268_v26, %v1174_v59  ;;  %v1270_v54 = vpop.f32.mrb[18].mxu1  ;;  %v2786_v32 = vpack.i.bf16 %v3675_v5, %v3673_v9  ;;  %v1293_v2 = vmul.f32 %v3675_v5, %v3249_v37  ;;  %v1298_v62 = vmul.f32 %v3675_v5, %v3255_v40  ;;  %v4409_v59 = vld [vmem:[#allocation10_spill] sm:$0xff]  ;;  %v4413_v26 = vld [vmem:[#allocation19_spill] sm:$0xff] }
 0x4ce   :  { %v3689_v50 = vmax.f32 %v1267_v57, 0.0  ;;  %v1271_v27 = vpop.f32.mrb[19].mxu1  ;;  %v1303_v41 = vmul.f32 %v3675_v5, %v3268_v45  ;;  %v1311_v52 = vmul.f32 %v3673_v9, %v3231_v22  ;;  %v1312_v12 = vmul.f32 %v3675_v5, %v3272_v46  ;;  %v4414_v54 = vld [vmem:[#allocation20_spill] sm:$0xff] }
 0x4cf   :  { %v3697_v38 = vmax.f32 %v1269_v56, 0.0  ;;  %2787 = vrot.lane.b32.xlu0 %v2786_v32, %s3005_s20  ;;  %v2796_v19 = vpack.i.bf16 %v1293_v2, %v1292_v60  ;;  %v2806_v28 = vpack.i.bf16 %v1298_v62, %v1297_v10  ;;  %v1316_v25 = vmul.f32 %v3673_v9, %v3233_v24  ;;  %v4415_v62 = vld [vmem:[#allocation18_spill] sm:$0xff] }
 0x4d0   :  { %v1294_v30 = vmul.f32 %v3689_v50, %v3259_v42  ;;  %v1299_v15 = vmul.f32 %v3689_v50, %v4406_v61  ;;  %v2816_v51 = vpack.i.bf16 %v1303_v41, %v1302_v47  ;;  %v1304_v31 = vmul.f32 %v3689_v50, %v4407_v58  ;;  %v4416_v41 = vld [vmem:[#allocation12_spill] sm:$0xff] }
 0x4d1   :  { %v2791_v16 = vpack.i.bf16 %v3697_v38, %v3689_v50  ;;  %v1295_v34 = vmul.f32 %v3697_v38, %v4408_v49  ;;  %v1300_v1 = vmul.f32 %v3697_v38, %v4409_v59  ;;  %v1305_v3 = vmul.f32 %v3697_v38, %v4410_v55 }
 0x4d2   :  { %v2826_v53 = vpack.i.bf16 %v1312_v12, %v1311_v52  ;;  %v1313_v43 = vmul.f32 %v3689_v50, %v4411_v23  ;;  %v1314_v57 = vmul.f32 %v3697_v38, %v4412_v8  ;;  %v1318_v60 = vmul.f32 %v3689_v50, %v4413_v26  ;;  %v4417_v12 = vld [vmem:[#allocation21_spill] sm:$0xff] }
 0x4d3   :  { %2792 = vrot.lane.b32.xlu1 %v2791_v16, %s3005_s20  ;;  %v2801_v10 = vpack.i.bf16 %v1295_v34, %v1294_v30  ;;  %v2811_v47 = vpack.i.bf16 %v1300_v1, %v1299_v15  ;;  %v2821_v56 = vpack.i.bf16 %v1305_v3, %v1304_v31  ;;  %v1319_v32 = vmul.f32 %v3697_v38, %v4414_v54  ;;  %v4418_v16 = vld [vmem:[#allocation22_spill] sm:$0xff]  ;;  %v4419_v15 = vld [vmem:[#allocation23_spill] sm:$0xff]  ;;  %v4420_v34 = vld [vmem:[#allocation25_spill] sm:$0xff] }
 0x4d4   :  { %v2831_v2 = vpack.i.bf16 %v1314_v57, %v1313_v43  ;;  %v1317_v27 = vmul.f32 %v3675_v5, %v4415_v62  ;;  %v1321_v52 = vmul.f32 %v3673_v9, %v4416_v41  ;;  %v1322_v8 = vmul.f32 %v3675_v5, %v4417_v12  ;;  %v4421_v57 = vld [vmem:[#allocation26_spill] sm:$0xff]  ;;  %v4422_v62 = vld [vmem:[#allocation13_spill] sm:$0xff] }
 0x4d5   :  { %2802 = vrot.lane.b32.xlu0 %v2801_v10, %s3000_s27  ;;  %v2841_v26 = vpack.i.bf16 %v1319_v32, %v1318_v60  ;;  %v1323_v30 = vmul.f32 %v3689_v50, %v4418_v16  ;;  %v1324_v31 = vmul.f32 %v3697_v38, %v4419_v15  ;;  %v1328_v1 = vmul.f32 %v3689_v50, %v4420_v34  ;;  %v4423_v10 = vld [vmem:[#allocation24_spill] sm:$0xff] }
 0x4d6   :  { %v2836_v3 = vpack.i.bf16 %v1317_v27, %v1316_v25  ;;  %v2846_v43 = vpack.i.bf16 %v1322_v8, %v1321_v52  ;;  %v1329_v41 = vmul.f32 %v3697_v38, %v4421_v57  ;;  %v1326_v12 = vmul.f32 %v3673_v9, %v4422_v62  ;;  %v1337_v25 = vpop.permute.xlu1 %1336 }
 0x4d7   :  { %2797 = vrot.lane.b32.xlu1 %v2796_v19, %s3000_s27  ;;  %v2851_v60 = vpack.i.bf16 %v1324_v31, %v1323_v30  ;;  %v1327_v32 = vmul.f32 %v3675_v5, %v4423_v10  ;;  %v4424_v19 = vld [vmem:[#allocation27_spill] sm:$0xff]  ;;  %v1290_v55 = vmul.f32 %v3697_v38, %v3408_v13 }
 0x4d8   :  { %v2861_v16 = vpack.i.bf16 %v1329_v41, %v1328_v1 }
 0x4d9   :  { %2807 = vrot.lane.b32.xlu0 %v2806_v28, %s3006_s9  ;;  %v2856_v15 = vpack.i.bf16 %v1327_v32, %v1326_v12  ;;  %v1361_v28 = vpop.permute.xlu0 %1360 }
 0x4db   :  { %2812 = vrot.lane.b32.xlu1 %v2811_v47, %s3006_s9 }
 0x4dd   :  { %2817 = vrot.lane.b32.xlu0 %v2816_v51, %s2998_s19  ;;  %v3759_v51 = vpop.permute.xlu0 %1436 }
 0x4df   :  { %2822 = vrot.lane.b32.xlu1 %v2821_v56, %s2998_s19 }
 0x4e1   :  { %2827 = vrot.lane.b32.xlu0 %v2826_v53, %s3007_s21  ;;  %v1385_v53 = vpop.permute.xlu1 %1384  ;;  %v1485_v8 = vpop.permute.xlu0 %1484 }
 0x4e3   :  { %2832 = vrot.lane.b32.xlu1 %v2831_v2, %s3007_s21 }
 0x4e5   :  { %2842 = vrot.lane.b32.xlu0 %v2841_v26, %s2995_s23  ;;  %v1461_v26 = vpop.permute.xlu1 %1460 }
 0x4e7   :  { %2837 = vrot.lane.b32.xlu1 %v2836_v3, %s2995_s23 }
 0x4e9   :  { %2847 = vrot.lane.b32.xlu0 %v2846_v43, %s3008_s22 }
 0x4eb   :  { %2852 = vrot.lane.b32.xlu1 %v2851_v60, %s3008_s22 }
 0x4ed   :  { %2862 = vrot.lane.b32.xlu0 %v2861_v16, %s3009_s24 }
 0x4ef   :  { %2857 = vrot.lane.b32.xlu1 %v2856_v15, %s3009_s24 }
 0x4f3   :  { %1508 = vrot.lane.b32.xlu1 %v4424_v19, %s3009_s24 }
 0x541   :  { %v3761_v47 = vpop.permute.xlu0 %2787 }
 0x542   :  { %v4374_v15 = vunpack.i.l.bf16 %v3761_v47 }
 0x545   :  { %v3763_v56 = vpop.permute.xlu1 %2792 }
 0x547   :  { %v3765_v2 = vpop.permute.xlu0 %2802 }
 0x549   :  { %v2798_v27 = vpop.permute.xlu1 %2797 }
 0x54a   :  { %v2799_v59 = vunpack.i.l.bf16 %v2798_v27  ;;  %v2800_v58 = vunpack.i.h.bf16 %v2798_v27 }
 0x54b   :  { %v3767_v41 = vpop.permute.xlu0 %2807 }
 0x54d   :  { %v3769_v52 = vpop.permute.xlu1 %2812 }
 0x54f   :  { %v3771_v12 = vpop.permute.xlu0 %2817 }
 0x551   :  { %v3773_v16 = vpop.permute.xlu1 %2822 }
 0x552   :  { %v2825_v27 = vunpack.i.h.bf16 %v3773_v16 }
 0x553   :  { %v3775_v30 = vpop.permute.xlu0 %2827 }
 0x554   :  { %v4375_v31 = vunpack.i.l.bf16 %v3775_v30 }
 0x555   :  { %v3779_v1 = vpop.permute.xlu1 %2832 }
 0x556   :  { %v1529_v3 = vpack.c.bf16 %v4375_v31, %v4374_v15  ;;  %v2805_v15 = vunpack.i.h.bf16 %v3765_v2  ;;  %v2819_v31 = vunpack.i.l.bf16 %v3771_v12 }
 0x557   :  { %v3785_v43 = vpop.permute.xlu0 %2842 }
 0x558   :  { %1598 = vrot.lane.b32.xlu0 %v1529_v3, %s3004_s0  ;;  %v4378_v19 = vunpack.i.h.bf16 %v3785_v43 }
 0x559   :  { %v3788_v60 = vpop.permute.xlu1 %2837 }
 0x55a   :  { %v4376_v10 = vunpack.i.l.bf16 %v3788_v60  ;;  %v3807_v54 = vsel %vm737_vm13, %v4378_v19, %v1461_v26  ;;  %v1523_v19 = vpack.c.bf16 %v2805_v15, %v1290_v55 }
 0x55b   :  { %v3790_v32 = vpop.permute.xlu0 %2847 }
 0x55c   :  { %v4377_v62 = vunpack.i.l.bf16 %v3790_v32 }
 0x55d   :  { %v3795_v57 = vpop.permute.xlu1 %2852 }
 0x55e   :  { %v4379_v34 = vunpack.i.h.bf16 %v3795_v57  ;;  %v1534_v3 = vpack.c.bf16 %v4377_v62, %v4376_v10  ;;  %v2809_v62 = vunpack.i.l.bf16 %v3767_v41 }
 0x560   :  { %v3812_v23 = vsel %vm762_vm12, %v4379_v34, %v1485_v8  ;;  %1608 = vrot.lane.b32.xlu1 %v1534_v3, %s3004_s0  ;;  %v1394_v8 = vsel %vm351_vm2, %v1385_v53, %v2819_v31  ;;  %v1346_v34 = vsel %vm429_vm4, %v1337_v25, %v2799_v59  ;;  %v2804_v3 = vunpack.i.l.bf16 %v3765_v2 }
 0x561   :  { %v3819_v10 = vpop.permute.xlu1 %2857  ;;  %v1370_v49 = vsel %vm643_vm10, %v1361_v28, %v2809_v62  ;;  %v1519_v55 = vpack.c.bf16 %v1346_v34, %v3474_v33  ;;  %v2820_v53 = vunpack.i.h.bf16 %v3771_v12  ;;  %v1288_v25 = vmul.f32 %v3675_v5, %v3479_v7 }
 0x562   :  { %v3823_v26 = vunpack.i.l.bf16 %v3819_v10  ;;  %v1524_v13 = vpack.c.bf16 %v1394_v8, %v1370_v49  ;;  %v1348_v61 = vsel %vm429_vm4, %v2800_v58, %v2804_v3  ;;  %v2815_v28 = vunpack.i.h.bf16 %v3769_v52 }
 0x563   :  { %v1521_v49 = vpack.c.bf16 %v1348_v61, %v1288_v25  ;;  %v1395_v2 = vsel %vm351_vm2, %v2819_v31, %v2820_v53  ;;  %v2824_v34 = vunpack.i.l.bf16 %v3773_v16  ;;  %v1347_v12 = vsel %vm429_vm4, %v2799_v59, %v2800_v58 }
 0x564   :  { %v1539_v38 = vpack.c.bf16 %v3823_v26, %v3823_v26  ;;  %1586 = vrot.lane.b32.xlu1 %v1523_v19, %s3004_s0  ;;  %v2810_v19 = vunpack.i.h.bf16 %v3767_v41  ;;  %v1528_v8 = vpack.c.bf16 %v2825_v27, %v2815_v28  ;;  %v1287_v5 = vmul.f32 %v3673_v9, %v3495_v11 }
 0x565   :  { %v2814_v41 = vunpack.i.l.bf16 %v3769_v52  ;;  %v1397_v31 = vsel %vm351_vm2, %v2824_v34, %v2825_v27  ;;  %v2834_v16 = vunpack.i.l.bf16 %v3779_v1  ;;  %v2794_v58 = vunpack.i.l.bf16 %v3763_v56 }
 0x566   :  { %1618 = vrot.lane.b32.xlu0 %v1539_v38, %s3004_s0  ;;  %v1520_v61 = vpack.c.bf16 %v1347_v12, %v1287_v5  ;;  %v1289_v9 = vmul.f32 %v3689_v50, %v3509_v48  ;;  %v2790_v27 = vunpack.i.h.bf16 %v3761_v47  ;;  %v2850_v5 = vunpack.i.h.bf16 %v3790_v32 }
 0x567   :  { %v1373_v59 = vsel %vm643_vm10, %v2814_v41, %v2815_v28  ;;  %v1372_v28 = vsel %vm643_vm10, %v2810_v19, %v2814_v41 }
 0x568   :  { %1588 = vrot.lane.b32.xlu1 %v1524_v13, %s3004_s0  ;;  %v1371_v13 = vsel %vm643_vm10, %v2809_v62, %v2810_v19  ;;  %v2830_v62 = vunpack.i.h.bf16 %v3775_v30  ;;  %v1527_v52 = vpack.c.bf16 %v1397_v31, %v1373_v59  ;;  %v1416_v50 = vsel %vm312_vm9, %v2790_v27, %v2794_v58 }
 0x569   :  { %v1525_v38 = vpack.c.bf16 %v1395_v2, %v1371_v13  ;;  %v4425_v13 = vunpack.i.l.bf16 %v3775_v30  ;;  %v4426_v19 = vunpack.i.l.bf16 %v3761_v47  ;;  %v2854_v30 = vunpack.i.l.bf16 %v3795_v57 }
 0x56a   :  { %1578 = vrot.lane.b32.xlu0 %v1519_v55, %s3004_s0  ;;  %v1349_v55 = vsel %vm429_vm4, %v2804_v3, %v2805_v15  ;;  %v1439_v15 = vsel %vm712_vm11, %v2830_v62, %v2834_v16  ;;  %v1396_v3 = vsel %vm351_vm2, %v2820_v53, %v2824_v34  ;;  %v2840_v34 = vunpack.i.h.bf16 %v3788_v60 }
 0x56b   :  { %v1522_v25 = vpack.c.bf16 %v1349_v55, %v1289_v9  ;;  %v1531_v2 = vpack.c.bf16 %v1439_v15, %v1416_v50  ;;  %v1438_v53 = vsel %vm712_vm11, %v4425_v13, %v2830_v62  ;;  %v1415_v41 = vsel %vm312_vm9, %v4426_v19, %v2790_v27 }
 0x56c   :  { %1582 = vrot.lane.b32.xlu1 %v1521_v49, %s3004_s0  ;;  %v2835_v49 = vunpack.i.h.bf16 %v3779_v1  ;;  %v2795_v1 = vunpack.i.h.bf16 %v3763_v56  ;;  %v2844_v55 = vunpack.i.l.bf16 %v3785_v43  ;;  %v4428_v9 = vunpack.i.l.bf16 %v3788_v60 }
 0x56d   :  { %v4430_v60 = vunpack.i.h.bf16 %v3785_v43 }
 0x56e   :  { %1596 = vrot.lane.b32.xlu0 %v1528_v8, %s3004_s0  ;;  %v1526_v8 = vpack.c.bf16 %v1396_v3, %v1372_v28  ;;  %v1441_v12 = vsel %vm712_vm11, %v2835_v49, %v3759_v51  ;;  %v1530_v51 = vpack.c.bf16 %v1438_v53, %v1415_v41  ;;  %v1440_v31 = vsel %vm712_vm11, %v2834_v16, %v2835_v49  ;;  %v2863_v49 = vpop.permute.xlu0 %2862  ;;  %v2660_v53 = vld [vmem:[%s4323_s4 + $0x8] sm:$0xff] }
 0x56f   :  { %v1462_v47 = vsel %vm737_vm13, %v4428_v9, %v2840_v34  ;;  %v1417_v59 = vsel %vm312_vm9, %v2794_v58, %v2795_v1  ;;  %v2860_v16 = vunpack.i.h.bf16 %v3819_v10  ;;  %v1464_v15 = vsel %vm737_vm13, %v2844_v55, %v4430_v60 }
 0x570   :  { %1590 = vrot.lane.b32.xlu1 %v1525_v38, %s3004_s0  ;;  %v1533_v38 = vpack.c.bf16 %v1441_v12, %v2795_v1  ;;  %v1463_v58 = vsel %vm737_vm13, %v2840_v34, %v2844_v55  ;;  %v2864_v28 = vunpack.i.l.bf16 %v2863_v49  ;;  %v1509_v12 = vpop.permute.xlu1 %1508 }
 0x571   :  { %v1510_v10 = vsel %vm787_vm14, %v3823_v26, %v2860_v16 }
 0x572   :  { %1580 = vrot.lane.b32.xlu0 %v1520_v61, %s3004_s0  ;;  %v4427_v61 = vunpack.i.l.bf16 %v3790_v32  ;;  %v1532_v32 = vpack.c.bf16 %v1440_v31, %v1417_v59 }
 0x574   :  { %1594 = vrot.lane.b32.xlu1 %v1527_v52, %s3004_s0  ;;  %v1486_v56 = vsel %vm762_vm12, %v4427_v61, %v2850_v5  ;;  %v4429_v52 = vunpack.i.h.bf16 %v3795_v57  ;;  %v2865_v57 = vunpack.i.h.bf16 %v2863_v49 }
 0x575   :  { %v1535_v62 = vpack.c.bf16 %v1486_v56, %v1462_v47 }
 0x576   :  { %1584 = vrot.lane.b32.xlu0 %v1522_v25, %s3004_s0  ;;  %v1488_v27 = vsel %vm762_vm12, %v2854_v30, %v4429_v52  ;;  %v1487_v25 = vsel %vm762_vm12, %v2850_v5, %v2854_v30  ;;  %v1512_v43 = vsel %vm787_vm14, %v2864_v28, %v2865_v57  ;;  %v4431_v5 = vpack.c.bf16 %v3812_v23, %v3807_v54  ;;  %v2671_v23 = vld [vmem:[%s4321_s2 + $0x10] sm:$0xff]  ;;  %v2665_v54 = vld [vmem:[%s4325_s6 + $0x8] sm:$0xff] }
 0x577   :  { %v1537_v3 = vpack.c.bf16 %v1488_v27, %v1464_v15  ;;  %v1536_v50 = vpack.c.bf16 %v1487_v25, %v1463_v58  ;;  %v1542_v1 = vpack.c.bf16 %v1512_v43, %v1512_v43  ;;  %v1513_v26 = vsel %vm787_vm14, %v2865_v57, %v1509_v12 }
 0x578   :  { %1602 = vrot.lane.b32.xlu1 %v1531_v2, %s3004_s0  ;;  %v1540_v2 = vpack.c.bf16 %v1510_v10, %v1510_v10  ;;  %v1543_v34 = vpack.c.bf16 %v1513_v26, %v1513_v26 }
 0x57a   :  { %1592 = vrot.lane.b32.xlu0 %v1526_v8, %s3004_s0  ;;  %v1511_v8 = vsel %vm787_vm14, %v2860_v16, %v2864_v28 }
 0x57b   :  { %v1541_v13 = vpack.c.bf16 %v1511_v8, %v1511_v8 }
 0x57c   :  { %1606 = vrot.lane.b32.xlu1 %v1533_v38, %s3004_s0 }
 0x57e   :  { %1600 = vrot.lane.b32.xlu0 %v1530_v51, %s3004_s0 }
 0x580   :  { %1610 = vrot.lane.b32.xlu1 %v1535_v62, %s3004_s0 }
 0x582   :  { %1604 = vrot.lane.b32.xlu0 %v1532_v32, %s3004_s0 }
 0x584   :  { %1614 = vrot.lane.b32.xlu1 %v1537_v3, %s3004_s0 }
 0x586   :  { %1612 = vrot.lane.b32.xlu0 %v1536_v50, %s3004_s0 }
 0x588   :  { %1620 = vrot.lane.b32.xlu1 %v1540_v2, %s3004_s0 }
 0x58a   :  { %1616 = vrot.lane.b32.xlu0 %v4431_v5, %s3004_s0 }
 0x58c   :  { %1624 = vrot.lane.b32.xlu1 %v1542_v1, %s3004_s0 }
 0x58e   :  { %1622 = vrot.lane.b32.xlu0 %v1541_v13, %s3004_s0 }
 0x590   :  { %1550 = vperm.xlu1 %2785, %v2660_v53  }
 0x592   :  { %1626 = vrot.lane.b32.xlu0 %v1543_v34, %s3004_s0 }
 0x594   :  { %1897 = vperm.xlu1 %2785, %v2671_v23  }
 0x596   :  { %1775 = vperm.xlu0 %2704, %v2665_v54   ;;  %v2659_v54 = vld [vmem:[%s4322_s3 + $0x4] sm:$0xf] }
 0x598   :  { %2084 = vrot.lane.b32.xlu1 %v3199_v63, %s3006_s9 }
 0x59a   :  { %2060 = vrot.lane.b32.xlu0 %v3205_v4, %s3000_s27 }
 0x59c   :  { %2160 = vrot.lane.b32.xlu1 %v3219_v14, %s3007_s21 }
 0x59e   :  { %2108 = vrot.lane.b32.xlu0 %v3207_v6, %s2998_s19 }
 0x5a0   :  { %2208 = vrot.lane.b32.xlu1 %v3227_v20, %s3008_s22 }
 0x5a2   :  { %2184 = vrot.lane.b32.xlu0 %v3223_v17, %s2995_s23 }
 0x5ca   :  { %v1599_v41 = vpop.permute.xlu0 %1598 }
 0x5d2   :  { %v1609_v19 = vpop.permute.xlu1 %1608 }
 0x5d6   :  { %v1587_v38 = vpop.permute.xlu1 %1586 }
 0x5d8   :  { %v1619_v51 = vpop.permute.xlu0 %1618 }
 0x5da   :  { %v1589_v63 = vpop.permute.xlu1 %1588 }
 0x5dc   :  { %v1579_v61 = vpop.permute.xlu0 %1578 }
 0x5de   :  { %v1583_v56 = vpop.permute.xlu1 %1582 }
 0x5e0   :  { %v1597_v4 = vpop.permute.xlu0 %1596 }
 0x5e2   :  { %v1591_v30 = vpop.permute.xlu1 %1590 }
 0x5e3   :  { %v1632_v27 = vsel %vm590_vm8, %v1589_v63, %v1591_v30 }
 0x5e4   :  { %v1581_v31 = vpop.permute.xlu0 %1580 }
 0x5e5   :  { %v1628_v14 = vsel %vm590_vm8, %v1579_v61, %v1581_v31  ;;  %v1629_v6 = vsel %vm590_vm8, %v1581_v31, %v1583_v56 }
 0x5e6   :  { %1679 = vmatprep.subr.bf16.mxu0 %v1629_v6  ;;  %v1595_v55 = vpop.permute.xlu1 %1594 }
 0x5e7   :  { %1680 = vmatpush1.bf16.msra.mxu0 %v1628_v14  ;;  %v1635_v59 = vsel %vm590_vm8, %v1595_v55, %v1597_v4 }
 0x5e8   :  { %v1585_v20 = vpop.permute.xlu0 %1584 }
 0x5e9   :  { %v1630_v17 = vsel %vm590_vm8, %v1583_v56, %v1585_v20  ;;  %v1631_v9 = vsel %vm590_vm8, %v1585_v20, %v1587_v38 }
 0x5ea   :  { %1720 = vmatprep.subr.bf16.mxu1 %v1631_v9  ;;  %v1603_v47 = vpop.permute.xlu1 %1602 }
 0x5eb   :  { %1721 = vmatpush1.bf16.msra.mxu1 %v1630_v17 }
 0x5ec   :  { %1722 = vmatprep.subr.bf16.mxu1 %v1635_v59  ;;  %v1593_v62 = vpop.permute.xlu0 %1592 }
 0x5ed   :  { %v1634_v32 = vsel %vm590_vm8, %v1593_v62, %v1595_v55  ;;  %v1633_v52 = vsel %vm590_vm8, %v1591_v30, %v1593_v62 }
 0x5ee   :  { %1681 = vmatprep.subr.bf16.mxu0 %v1633_v52  ;;  %v1607_v16 = vpop.permute.xlu1 %1606 }
 0x5ef   :  { %1682 = vmatpush1.bf16.msra.mxu0 %v1632_v27  ;;  %1723 = vmatpush1.bf16.msra.mxu1 %v1634_v32 }
 0x5f0   :  { %v1601_v25 = vpop.permute.xlu0 %1600 }
 0x5f1   :  { %v1636_v49 = vsel %vm590_vm8, %v1599_v41, %v1601_v25  ;;  %v1637_v60 = vsel %vm590_vm8, %v1601_v25, %v1603_v47 }
 0x5f2   :  { %1683 = vmatprep.subr.bf16.mxu0 %v1637_v60  ;;  %v1611_v15 = vpop.permute.xlu1 %1610 }
 0x5f3   :  { %1684 = vmatpush1.bf16.msra.mxu0 %v1636_v49  ;;  %v1640_v2 = vsel %vm590_vm8, %v1609_v19, %v1611_v15  ;;  %v1766_v49 = vld [vmem:[#allocation3 + $0x4] sm:$0xf] }
 0x5f4   :  { %v1605_v58 = vpop.permute.xlu0 %1604 }
 0x5f5   :  { %v1638_v3 = vsel %vm590_vm8, %v1603_v47, %v1605_v58  ;;  %v1639_v50 = vsel %vm590_vm8, %v1605_v58, %v1607_v16 }
 0x5f6   :  { %1724 = vmatprep.subr.bf16.mxu1 %v1639_v50  ;;  %v1615_v57 = vpop.permute.xlu1 %1614 }
 0x5f7   :  { %1725 = vmatpush1.bf16.msra.mxu1 %v1638_v3 }
 0x5f8   :  { %v1613_v28 = vpop.permute.xlu0 %1612 }
 0x5f9   :  { %v1641_v10 = vsel %vm590_vm8, %v1611_v15, %v1613_v28  ;;  %v1642_v5 = vsel %vm590_vm8, %v1613_v28, %v1615_v57 }
 0x5fa   :  { %1685 = vmatprep.subr.bf16.mxu0 %v1641_v10  ;;  %v1621_v43 = vpop.permute.xlu1 %1620 }
 0x5fb   :  { %1686 = vmatpush1.bf16.msra.mxu0 %v1640_v2  ;;  %v1644_v1 = vsel %vm590_vm8, %v1619_v51, %v1621_v43 }
 0x5fc   :  { %v1617_v8 = vpop.permute.xlu0 %1616  ;;  %v1668_v53 = vsel %vm87_vm0, %v1644_v1, 0 }
 0x5fd   :  { %v1643_v12 = vsel %vm590_vm8, %v1615_v57, %v1617_v8 }
 0x5fe   :  { %1726 = vmatprep.subr.bf16.mxu1 %v1643_v12  ;;  %v1625_v34 = vpop.permute.xlu1 %1624 }
 0x5ff   :  { %1727 = vmatpush1.bf16.msra.mxu1 %v1642_v5 }
 0x600   :  { %v1623_v13 = vpop.permute.xlu0 %1622 }
 0x601   :  { %v1645_v26 = vsel %vm590_vm8, %v1621_v43, %v1623_v13  ;;  %v1646_v23 = vsel %vm590_vm8, %v1623_v13, %v1625_v34 }
 0x602   :  { %2661 = vmatprep.subr.msk.bf16.mxu0 %vm87_vm0, %v1645_v26  ;;  %v1674_v38 = vsel %vm87_vm0, %v1646_v23, 0 }
 0x603   :  { %1688 = vmatpush1.bf16.msra.mxu0 %v1668_v53 }
 0x604   :  { %v1627_v19 = vpop.permute.xlu0 %1626 }
 0x605   :  { %v1647_v41 = vsel %vm590_vm8, %v1625_v34, %v1627_v19 }
 0x606   :  { %2662 = vmatmul.mubr.msk.bf16.vlgmr.msra.gmra.mrb[20].mxu0 %vm941_vm15, %v2659_v54  ;;  %2663 = vmatprep.subr.msk.bf16.mxu1 %vm87_vm0, %v1647_v41 }
 0x607   :  { %1729 = vmatpush1.bf16.msra.mxu1 %v1674_v38  ;;  %1825 = vmatprep.mubr.bf16.mxu0 %v4405_v18 }
 0x60a   :  { %2664 = vmatmul.mubr.msk.bf16.vlgmr.msra.gmra.mrb[20].mxu1 %vm941_vm15, %v2659_v54 }
 0x60b   :  { %1866 = vmatprep.mubr.bf16.mxu1 %v4405_v18 }
 0x60f   :  { %v1551_v51 = vpop.permute.xlu1 %1550 }
 0x615   :  { %v1776_v58 = vpop.permute.xlu0 %1775 }
 0x6d9   :  { %v1713_v63 = vpop.f32.mrb[20].mxu0 }
 0x6da   :  { %v1714_v61 = vadd.f32 %v1713_v63, %v1551_v51  ;;  %v1715_v56 = vpop.f32.mrb[21].mxu0 }
 0x6db   :  { %v1716_v4 = vadd.f32 %v1715_v56, %v1551_v51  ;;  %v1717_v30 = vpop.f32.mrb[22].mxu0 }
 0x6dc   :  { %v1761_v31 = vmax.f32 %v1714_v61, 0.0  ;;  %v1718_v14 = vpop.f32.mrb[23].mxu0 }
 0x6dd   :  { %v1762_v6 = vmax.f32 %v1716_v4, 0.0  ;;  %v1754_v55 = vpop.f32.mrb[20].mxu1  ;;  %v1898_v14 = vpop.permute.xlu1 %1897 }
 0x6de   :  { %v1767_v20 = vpack.c.bf16 %v1761_v31, %v1761_v31  ;;  %v1755_v17 = vadd.f32 %v1754_v55, %v1551_v51  ;;  %v1756_v9 = vpop.f32.mrb[21].mxu1 }
 0x6df   :  { %v1768_v47 = vpack.c.bf16 %v1762_v6, %v1762_v6  ;;  %v1757_v59 = vadd.f32 %v1756_v9, %v1551_v51  ;;  %v1758_v62 = vpop.f32.mrb[22].mxu1 }
 0x6e0   :  { %v1763_v32 = vmax.f32 %v1755_v17, 0.0  ;;  %v1759_v52 = vpop.f32.mrb[23].mxu1  ;;  %v1782_v27 = vsel %vm87_vm0, %v1767_v20, 0 }
 0x6e1   :  { %v1764_v16 = vmax.f32 %v1757_v59, 0.0  ;;  %2666 = vmatprep.subr.msk.bf16.mxu0 %vm87_vm0, %v1768_v47 }
 0x6e2   :  { %v1769_v25 = vpack.c.bf16 %v1763_v32, %v1763_v32  ;;  %1794 = vmatpush1.bf16.msra.mxu0 %v1782_v27 }
 0x6e3   :  { %v1770_v60 = vpack.c.bf16 %v1764_v16, %v1764_v16 }
 0x6e4   :  { %v1788_v15 = vsel %vm87_vm0, %v1769_v25, 0 }
 0x6e5   :  { %2667 = vmatmul.mubr.msk.bf16.vlgmr.msra.gmra.mrb[24].mxu0 %vm83_vm1, %v1766_v49  ;;  %2668 = vmatprep.subr.msk.bf16.mxu1 %vm87_vm0, %v1770_v60 }
 0x6e6   :  { %1835 = vmatpush1.bf16.msra.mxu1 %v1788_v15  ;;  %1947 = vmatprep.mubr.bf16.mxu0 %v4405_v18 }
 0x6e9   :  { %2669 = vmatmul.mubr.msk.bf16.vlgmr.msra.gmra.mrb[24].mxu1 %vm83_vm1, %v1766_v49 }
 0x6ea   :  { %1988 = vmatprep.mubr.bf16.mxu1 %v4405_v18 }
 0x7b8   :  { %v1827_v3 = vpop.f32.mrb[24].mxu0 }
 0x7b9   :  { %v1828_v50 = vadd.f32 %v1827_v3, %v1776_v58  ;;  %v1829_v57 = vpop.f32.mrb[25].mxu0 }
 0x7ba   :  { %v1830_v28 = vadd.f32 %v1829_v57, %v1776_v58  ;;  %v1831_v10 = vpop.f32.mrb[26].mxu0 }
 0x7bb   :  { %v1875_v2 = vmax.f32 %v1828_v50, 0.0  ;;  %v1832_v43 = vpop.f32.mrb[27].mxu0 }
 0x7bc   :  { %v1876_v8 = vmax.f32 %v1830_v28, 0.0  ;;  %v1868_v12 = vpop.f32.mrb[24].mxu1 }
 0x7bd   :  { %v1879_v5 = vadd.f32 %v1875_v2, %v3644_v0  ;;  %v1869_v1 = vadd.f32 %v1868_v12, %v1776_v58  ;;  %v1870_v13 = vpop.f32.mrb[25].mxu1 }
 0x7be   :  { %v1880_v26 = vadd.f32 %v1876_v8, %v3647_v35  ;;  %v1871_v53 = vadd.f32 %v1870_v13, %v1776_v58  ;;  %v1872_v34 = vpop.f32.mrb[26].mxu1  ;;  %v4432_v8 = vld [vmem:[#allocation14_spill] sm:$0xff] }
 0x7bf   :  { %v3983_v23 = vmax.f32 %v1879_v5, 0.0  ;;  %v1877_v54 = vmax.f32 %v1869_v1, 0.0  ;;  %v1873_v19 = vpop.f32.mrb[27].mxu1  ;;  %v4434_v1 = vld [vmem:[#allocation9_spill] sm:$0xff] }
 0x7c0   :  { %v3985_v41 = vmax.f32 %v1880_v26, 0.0  ;;  %v1878_v38 = vmax.f32 %v1871_v53, 0.0  ;;  %v4435_v26 = vld [vmem:[#allocation10_spill] sm:$0xff] }
 0x7c1   :  { %v1881_v51 = vadd.f32 %v1877_v54, %v3654_v21  ;;  %v1887_v63 = vpack.c.bf16 %v3983_v23, %v3983_v23  ;;  %v2670_v21 = vld [vmem:[%s4320_s1 + $0x8] sm:$0xf] }
 0x7c2   :  { %v1888_v0 = vpack.c.bf16 %v3985_v41, %v3985_v41  ;;  %v1882_v61 = vadd.f32 %v1878_v38, %v3657_v29  ;;  %v4437_v54 = vld [vmem:[#allocation16_spill] sm:$0xff]  ;;  %v4438_v38 = vld [vmem:[#allocation17_spill] sm:$0xff] }
 0x7c3   :  { %v3993_v35 = vmax.f32 %v1881_v51, 0.0  ;;  %v1904_v56 = vsel %vm87_vm0, %v1887_v63, 0  ;;  %v4439_v63 = vld [vmem:[#allocation19_spill] sm:$0xff] }
 0x7c4   :  { %v3996_v4 = vmax.f32 %v1882_v61, 0.0  ;;  %2672 = vmatprep.subr.msk.bf16.mxu0 %vm87_vm0, %v1888_v0 }
 0x7c5   :  { %1916 = vmatpush1.bf16.msra.mxu0 %v1904_v56  ;;  %v1889_v30 = vpack.c.bf16 %v3993_v35, %v3993_v35 }
 0x7c6   :  { %v1890_v31 = vpack.c.bf16 %v3996_v4, %v3996_v4 }
 0x7c7   :  { %v1910_v29 = vsel %vm87_vm0, %v1889_v30, 0  ;;  %v4440_v30 = vld [vmem:[#allocation20_spill] sm:$0xff] }
 0x7c8   :  { %2673 = vmatmul.mubr.msk.bf16.vlgmr.msra.gmra.mrb[28].mxu0 %vm83_vm1, %v2670_v21  ;;  %2674 = vmatprep.subr.msk.bf16.mxu1 %vm87_vm0, %v1890_v31 }
 0x7c9   :  { %1957 = vmatpush1.bf16.msra.mxu1 %v1910_v29  ;;  %2435 = vmatprep.mubr.bf16.mxu0 %v4405_v18 }
 0x7cc   :  { %2675 = vmatmul.mubr.msk.bf16.vlgmr.msra.gmra.mrb[28].mxu1 %vm83_vm1, %v2670_v21 }
 0x7cd   :  { %2476 = vmatprep.mubr.bf16.mxu1 %v4405_v18 }
 0x89b   :  { %v1949_v6 = vpop.f32.mrb[28].mxu0 }
 0x89c   :  { %v1950_v55 = vadd.f32 %v1949_v6, %v1898_v14  ;;  %v1951_v20 = vpop.f32.mrb[29].mxu0 }
 0x89d   :  { %v1952_v17 = vadd.f32 %v1951_v20, %v1898_v14  ;;  %v1953_v9 = vpop.f32.mrb[30].mxu0 }
 0x89e   :  { %v4012_v47 = vmax.f32 %v1950_v55, 0.0  ;;  %v1954_v59 = vpop.f32.mrb[31].mxu0  ;;  %v4442_v55 = vld [vmem:[#allocation12_spill] sm:$0xff] }
 0x89f   :  { %v4014_v62 = vmax.f32 %v1952_v17, 0.0  ;;  %v1990_v32 = vpop.f32.mrb[28].mxu1  ;;  %v4443_v17 = vld [vmem:[#allocation21_spill] sm:$0xff] }
 0x8a0   :  { %v1991_v52 = vadd.f32 %v1990_v32, %v1898_v14  ;;  %v1992_v27 = vpop.f32.mrb[29].mxu1  ;;  %v2016_v16 = vmul.f32 %v4012_v47, %v3246_v36  ;;  %v2021_v25 = vmul.f32 %v4012_v47, %v3253_v39  ;;  %v2026_v49 = vmul.f32 %v4012_v47, %v3265_v44  ;;  %v4444_v32 = vld [vmem:[#allocation22_spill] sm:$0xff] }
 0x8a1   :  { %v1993_v60 = vadd.f32 %v1992_v27, %v1898_v14  ;;  %v1994_v15 = vpop.f32.mrb[30].mxu1  ;;  %v2866_v58 = vpack.i.bf16 %v4014_v62, %v4012_v47  ;;  %v2017_v3 = vmul.f32 %v4014_v62, %v3249_v37  ;;  %v2022_v50 = vmul.f32 %v4014_v62, %v3255_v40  ;;  %v4441_v14 = vld [vmem:[#allocation18_spill] sm:$0xff]  ;;  %v4445_v27 = vld [vmem:[#allocation23_spill] sm:$0xff] }
 0x8a2   :  { %v4028_v57 = vmax.f32 %v1991_v52, 0.0  ;;  %v1995_v36 = vpop.f32.mrb[31].mxu1  ;;  %v2027_v39 = vmul.f32 %v4014_v62, %v3268_v45  ;;  %v2035_v44 = vmul.f32 %v4012_v47, %v3231_v22  ;;  %v2036_v28 = vmul.f32 %v4014_v62, %v3272_v46  ;;  %v4433_v22 = vld [vmem:[#allocation15_spill] sm:$0xff] }
 0x8a3   :  { %v4036_v10 = vmax.f32 %v1993_v60, 0.0  ;;  %2867 = vrot.lane.b32.xlu1 %v2866_v58, %s3005_s20  ;;  %v2876_v37 = vpack.i.bf16 %v2017_v3, %v2016_v16  ;;  %v2886_v2 = vpack.i.bf16 %v2022_v50, %v2021_v25  ;;  %v2040_v40 = vmul.f32 %v4012_v47, %v3233_v24  ;;  %v4436_v24 = vld [vmem:[#allocation11_spill] sm:$0xff]  ;;  %v4446_v25 = vld [vmem:[#allocation25_spill] sm:$0xff]  ;;  %v4447_v58 = vld [vmem:[#allocation26_spill] sm:$0xff] }
 0x8a4   :  { %v2018_v43 = vmul.f32 %v4028_v57, %v3259_v42  ;;  %v2023_v45 = vmul.f32 %v4028_v57, %v4432_v8  ;;  %v2896_v12 = vpack.i.bf16 %v2027_v39, %v2026_v49  ;;  %v2028_v5 = vmul.f32 %v4028_v57, %v4433_v22  ;;  %v4448_v50 = vld [vmem:[#allocation13_spill] sm:$0xff] }
 0x8a5   :  { %v2871_v46 = vpack.i.bf16 %v4036_v10, %v4028_v57  ;;  %v2019_v13 = vmul.f32 %v4036_v10, %v4434_v1  ;;  %v2024_v53 = vmul.f32 %v4036_v10, %v4435_v26  ;;  %v2029_v34 = vmul.f32 %v4036_v10, %v4436_v24 }
 0x8a6   :  { %v2906_v42 = vpack.i.bf16 %v2036_v28, %v2035_v44  ;;  %v2037_v19 = vmul.f32 %v4028_v57, %v4437_v54  ;;  %v2038_v51 = vmul.f32 %v4036_v10, %v4438_v38  ;;  %v2042_v0 = vmul.f32 %v4028_v57, %v4439_v63  ;;  %v4449_v44 = vld [vmem:[#allocation24_spill] sm:$0xff] }
 0x8a7   :  { %2872 = vrot.lane.b32.xlu0 %v2871_v46, %s3005_s20  ;;  %v2881_v61 = vpack.i.bf16 %v2019_v13, %v2018_v43  ;;  %v2891_v56 = vpack.i.bf16 %v2024_v53, %v2023_v45  ;;  %v2901_v21 = vpack.i.bf16 %v2029_v34, %v2028_v5  ;;  %v2043_v31 = vmul.f32 %v4036_v10, %v4440_v30 }
 0x8a8   :  { %v2911_v29 = vpack.i.bf16 %v2038_v51, %v2037_v19  ;;  %v2041_v6 = vmul.f32 %v4014_v62, %v4441_v14  ;;  %v2045_v20 = vmul.f32 %v4012_v47, %v4442_v55  ;;  %v2046_v9 = vmul.f32 %v4014_v62, %v4443_v17 }
 0x8a9   :  { %2882 = vrot.lane.b32.xlu1 %v2881_v61, %s3000_s27  ;;  %v2921_v59 = vpack.i.bf16 %v2043_v31, %v2042_v0  ;;  %v2047_v52 = vmul.f32 %v4028_v57, %v4444_v32  ;;  %v2048_v16 = vmul.f32 %v4036_v10, %v4445_v27  ;;  %v2052_v49 = vmul.f32 %v4028_v57, %v4446_v25 }
 0x8aa   :  { %v2916_v60 = vpack.i.bf16 %v2041_v6, %v2040_v40  ;;  %v2926_v15 = vpack.i.bf16 %v2046_v9, %v2045_v20  ;;  %v2053_v3 = vmul.f32 %v4036_v10, %v4447_v58  ;;  %v2050_v36 = vmul.f32 %v4012_v47, %v4448_v50  ;;  %v2061_v40 = vpop.permute.xlu0 %2060 }
 0x8ab   :  { %2877 = vrot.lane.b32.xlu0 %v2876_v37, %s3000_s27  ;;  %v2931_v39 = vpack.i.bf16 %v2048_v16, %v2047_v52  ;;  %v2051_v28 = vmul.f32 %v4014_v62, %v4449_v44  ;;  %v4450_v37 = vld [vmem:[#allocation27_spill] sm:$0xff] }
 0x8ac   :  { %v2941_v43 = vpack.i.bf16 %v2053_v3, %v2052_v49 }
 0x8ad   :  { %2887 = vrot.lane.b32.xlu1 %v2886_v2, %s3006_s9  ;;  %v2936_v8 = vpack.i.bf16 %v2051_v28, %v2050_v36  ;;  %v2085_v2 = vpop.permute.xlu1 %2084 }
 0x8af   :  { %2892 = vrot.lane.b32.xlu0 %v2891_v56, %s3006_s9 }
 0x8b1   :  { %2897 = vrot.lane.b32.xlu1 %v2896_v12, %s2998_s19  ;;  %v4098_v45 = vpop.permute.xlu1 %2160  ;;  %v2109_v12 = vpop.permute.xlu0 %2108 }
 0x8b3   :  { %2902 = vrot.lane.b32.xlu0 %v2901_v21, %s2998_s19 }
 0x8b5   :  { %2907 = vrot.lane.b32.xlu1 %v2906_v42, %s3007_s21  ;;  %v2209_v22 = vpop.permute.xlu1 %2208  ;;  %v2185_v5 = vpop.permute.xlu0 %2184 }
 0x8b7   :  { %2912 = vrot.lane.b32.xlu0 %v2911_v29, %s3007_s21 }
 0x8b9   :  { %2922 = vrot.lane.b32.xlu1 %v2921_v59, %s2995_s23  ;;  %v4451_v59 = vld [vmem:[#allocation28_spill] sm:$0xff] }
 0x8ba   :  { %v2014_v32 = vmul.f32 %v4036_v10, %v4451_v59 }
 0x8bb   :  { %2917 = vrot.lane.b32.xlu0 %v2916_v60, %s2995_s23 }
 0x8bd   :  { %2927 = vrot.lane.b32.xlu1 %v2926_v15, %s3008_s22 }
 0x8bf   :  { %2932 = vrot.lane.b32.xlu0 %v2931_v39, %s3008_s22 }
 0x8c1   :  { %2942 = vrot.lane.b32.xlu1 %v2941_v43, %s3009_s24 }
 0x8c3   :  { %2937 = vrot.lane.b32.xlu0 %v2936_v8, %s3009_s24 }
 0x8c7   :  { %2232 = vrot.lane.b32.xlu0 %v4450_v37, %s3009_s24  ;;  %v2012_v37 = vmul.f32 %v4014_v62, %v3479_v7  ;;  %v2011_v7 = vmul.f32 %v4012_v47, %v3495_v11  ;;  %v2013_v11 = vmul.f32 %v4028_v57, %v3509_v48 }
 0x915   :  { %v4100_v46 = vpop.permute.xlu1 %2867 }
 0x916   :  { %v2869_v19 = vunpack.i.l.bf16 %v4100_v46 }
 0x919   :  { %v4102_v1 = vpop.permute.xlu0 %2872 }
 0x91b   :  { %v4104_v13 = vpop.permute.xlu1 %2882 }
 0x91c   :  { %v2885_v6 = vunpack.i.h.bf16 %v4104_v13  ;;  %v2884_v50 = vunpack.i.l.bf16 %v4104_v13 }
 0x91d   :  { %v2878_v26 = vpop.permute.xlu0 %2877 }
 0x91e   :  { %v2879_v52 = vunpack.i.l.bf16 %v2878_v26  ;;  %v2247_v60 = vpack.c.bf16 %v2885_v6, %v2014_v32  ;;  %v2880_v15 = vunpack.i.h.bf16 %v2878_v26  ;;  %v2870_v32 = vunpack.i.h.bf16 %v4100_v46 }
 0x91f   :  { %v4106_v53 = vpop.permute.xlu1 %2887 }
 0x920   :  { %v2889_v25 = vunpack.i.l.bf16 %v4106_v53  ;;  %v2070_v3 = vsel %vm429_vm4, %v2061_v40, %v2879_v52  ;;  %v2072_v44 = vsel %vm429_vm4, %v2880_v15, %v2884_v50  ;;  %v2890_v40 = vunpack.i.h.bf16 %v4106_v53 }
 0x921   :  { %v4108_v24 = vpop.permute.xlu0 %2892  ;;  %v2243_v28 = vpack.c.bf16 %v2070_v3, %v3474_v33  ;;  %v2071_v13 = vsel %vm429_vm4, %v2879_v52, %v2880_v15 }
 0x922   :  { %v2094_v36 = vsel %vm643_vm10, %v2085_v2, %v2889_v25  ;;  %v2895_v2 = vunpack.i.h.bf16 %v4108_v24  ;;  %v2095_v62 = vsel %vm643_vm10, %v2889_v25, %v2890_v40  ;;  %v2894_v26 = vunpack.i.l.bf16 %v4108_v24 }
 0x923   :  { %v4110_v34 = vpop.permute.xlu1 %2897 }
 0x924   :  { %v2899_v20 = vunpack.i.l.bf16 %v4110_v34  ;;  %v2900_v43 = vunpack.i.h.bf16 %v4110_v34  ;;  %v2244_v34 = vpack.c.bf16 %v2071_v13, %v2011_v7  ;;  %v2097_v47 = vsel %vm643_vm10, %v2894_v26, %v2895_v2  ;;  %v2677_v7 = vld [vmem:[%s4323_s4 + $0x10] sm:$0xff] }
 0x925   :  { %v4112_v42 = vpop.permute.xlu0 %2902  ;;  %v2096_v57 = vsel %vm643_vm10, %v2890_v40, %v2894_v26 }
 0x926   :  { %v2118_v58 = vsel %vm351_vm2, %v2109_v12, %v2899_v20  ;;  %v2905_v8 = vunpack.i.h.bf16 %v4112_v42  ;;  %v2245_v12 = vpack.c.bf16 %v2072_v44, %v2012_v37  ;;  %v2904_v33 = vunpack.i.l.bf16 %v4112_v42 }
 0x927   :  { %v4114_v54 = vpop.permute.xlu1 %2907  ;;  %v2248_v39 = vpack.c.bf16 %v2118_v58, %v2094_v36 }
 0x928   :  { %v2909_v38 = vunpack.i.l.bf16 %v4114_v54  ;;  %v2910_v24 = vunpack.i.h.bf16 %v4114_v54 }
 0x929   :  { %v4118_v51 = vpop.permute.xlu0 %2912 }
 0x92a   :  { %v2253_v63 = vpack.c.bf16 %v2909_v38, %v2869_v19  ;;  %v2914_v42 = vunpack.i.l.bf16 %v4118_v51  ;;  %v2915_v25 = vunpack.i.h.bf16 %v4118_v51  ;;  %v2875_v51 = vunpack.i.h.bf16 %v4102_v1 }
 0x92b   :  { %v4124_v0 = vpop.permute.xlu1 %2922 }
 0x92c   :  { %2322 = vrot.lane.b32.xlu1 %v2253_v63, %s3004_s0  ;;  %v2925_v21 = vunpack.i.h.bf16 %v4124_v0  ;;  %v2121_v63 = vsel %vm351_vm2, %v2904_v33, %v2905_v8 }
 0x92d   :  { %v4127_v61 = vpop.permute.xlu0 %2917  ;;  %v2251_v59 = vpack.c.bf16 %v2121_v63, %v2097_v47 }
 0x92e   :  { %v2919_v30 = vunpack.i.l.bf16 %v4127_v61  ;;  %v4146_v17 = vsel %vm737_vm13, %v2925_v21, %v2185_v5  ;;  %v2252_v5 = vpack.c.bf16 %v2905_v8, %v2895_v2  ;;  %v2920_v36 = vunpack.i.h.bf16 %v4127_v61 }
 0x92f   :  { %v4129_v56 = vpop.permute.xlu1 %2927 }
 0x930   :  { %v2929_v31 = vunpack.i.l.bf16 %v4129_v56  ;;  %v2930_v3 = vunpack.i.h.bf16 %v4129_v56  ;;  %v2186_v46 = vsel %vm737_vm13, %v2919_v30, %v2920_v36 }
 0x931   :  { %v4134_v29 = vpop.permute.xlu0 %2932 }
 0x932   :  { %v2935_v14 = vunpack.i.h.bf16 %v4134_v29  ;;  %v2258_v55 = vpack.c.bf16 %v2929_v31, %v2919_v30  ;;  %v2934_v54 = vunpack.i.l.bf16 %v4134_v29 }
 0x933   :  { %v2943_v40 = vpop.permute.xlu1 %2942 }
 0x934   :  { %v4151_v9 = vsel %vm762_vm12, %v2935_v14, %v2209_v22  ;;  %2332 = vrot.lane.b32.xlu0 %v2258_v55, %s3004_s0  ;;  %v2119_v22 = vsel %vm351_vm2, %v2899_v20, %v2900_v43  ;;  %v2073_v55 = vsel %vm429_vm4, %v2884_v50, %v2885_v6  ;;  %v2874_v20 = vunpack.i.l.bf16 %v4102_v1 }
 0x935   :  { %v2262_v27 = vpack.c.bf16 %v4151_v9, %v4146_v17  ;;  %v4158_v16 = vpop.permute.xlu0 %2937  ;;  %v2249_v53 = vpack.c.bf16 %v2119_v22, %v2095_v62  ;;  %v2246_v52 = vpack.c.bf16 %v2073_v55, %v2013_v11  ;;  %v2163_v6 = vsel %vm712_vm11, %v2910_v24, %v2914_v42  ;;  %v2682_v17 = vld [vmem:[%s4325_s6 + $0x10] sm:$0xff] }
 0x936   :  { %v4162_v49 = vunpack.i.l.bf16 %v4158_v16  ;;  %v2140_v48 = vsel %vm312_vm9, %v2870_v32, %v2874_v20  ;;  %v2162_v50 = vsel %vm712_vm11, %v2909_v38, %v2910_v24  ;;  %v2210_v1 = vsel %vm762_vm12, %v2929_v31, %v2930_v3 }
 0x937   :  { %v2255_v15 = vpack.c.bf16 %v2163_v6, %v2140_v48  ;;  %v2164_v38 = vsel %vm712_vm11, %v2914_v42, %v2915_v25  ;;  %v2212_v31 = vsel %vm762_vm12, %v2934_v54, %v2935_v14  ;;  %v2940_v8 = vunpack.i.h.bf16 %v4158_v16 }
 0x938   :  { %v2263_v10 = vpack.c.bf16 %v4162_v49, %v4162_v49  ;;  %2310 = vrot.lane.b32.xlu0 %v2247_v60, %s3004_s0  ;;  %v2120_v60 = vsel %vm351_vm2, %v2900_v43, %v2904_v33  ;;  %v2259_v43 = vpack.c.bf16 %v2210_v1, %v2186_v46  ;;  %v2211_v37 = vsel %vm762_vm12, %v2930_v3, %v2934_v54 }
 0x939   :  { %v2250_v58 = vpack.c.bf16 %v2120_v60, %v2096_v57  ;;  %v2945_v29 = vunpack.i.h.bf16 %v2943_v40  ;;  %v2944_v22 = vunpack.i.l.bf16 %v2943_v40  ;;  %v2234_v14 = vsel %vm787_vm14, %v4162_v49, %v2940_v8  ;;  %v2233_v33 = vpop.permute.xlu0 %2232 }
 0x93a   :  { %2342 = vrot.lane.b32.xlu1 %v2263_v10, %s3004_s0  ;;  %v2165_v10 = vsel %vm712_vm11, %v2915_v25, %v4098_v45  ;;  %v2264_v16 = vpack.c.bf16 %v2234_v14, %v2234_v14 }
 0x93b   :  { %v2257_v44 = vpack.c.bf16 %v2165_v10, %v2875_v51  ;;  %v2237_v49 = vsel %vm787_vm14, %v2945_v29, %v2233_v33 }
 0x93c   :  { %2312 = vrot.lane.b32.xlu0 %v2248_v39, %s3004_s0  ;;  %v2139_v39 = vsel %vm312_vm9, %v2869_v19, %v2870_v32  ;;  %v2141_v19 = vsel %vm312_vm9, %v2874_v20, %v2875_v51  ;;  %v2267_v62 = vpack.c.bf16 %v2237_v49, %v2237_v49 }
 0x93d   :  { %v2254_v45 = vpack.c.bf16 %v2162_v50, %v2139_v39  ;;  %v2256_v56 = vpack.c.bf16 %v2164_v38, %v2141_v19 }
 0x93e   :  { %2302 = vrot.lane.b32.xlu1 %v2243_v28, %s3004_s0  ;;  %v2924_v28 = vunpack.i.l.bf16 %v4124_v0  ;;  %v2236_v0 = vsel %vm787_vm14, %v2944_v22, %v2945_v29 }
 0x940   :  { %2306 = vrot.lane.b32.xlu0 %v2245_v12, %s3004_s0  ;;  %v2188_v61 = vsel %vm737_vm13, %v2924_v28, %v2925_v21  ;;  %v2187_v30 = vsel %vm737_vm13, %v2920_v36, %v2924_v28  ;;  %v2235_v21 = vsel %vm787_vm14, %v2940_v8, %v2944_v22 }
 0x941   :  { %v2261_v2 = vpack.c.bf16 %v2212_v31, %v2188_v61  ;;  %v2260_v12 = vpack.c.bf16 %v2211_v37, %v2187_v30  ;;  %v2265_v13 = vpack.c.bf16 %v2235_v21, %v2235_v21 }
 0x942   :  { %2320 = vrot.lane.b32.xlu1 %v2252_v5, %s3004_s0  ;;  %v2266_v5 = vpack.c.bf16 %v2236_v0, %v2236_v0 }
 0x944   :  { %2314 = vrot.lane.b32.xlu0 %v2249_v53, %s3004_s0 }
 0x946   :  { %2304 = vrot.lane.b32.xlu1 %v2244_v34, %s3004_s0 }
 0x948   :  { %2318 = vrot.lane.b32.xlu0 %v2251_v59, %s3004_s0 }
 0x94a   :  { %2308 = vrot.lane.b32.xlu1 %v2246_v52, %s3004_s0 }
 0x94c   :  { %2326 = vrot.lane.b32.xlu0 %v2255_v15, %s3004_s0 }
 0x94e   :  { %2316 = vrot.lane.b32.xlu1 %v2250_v58, %s3004_s0 }
 0x950   :  { %2330 = vrot.lane.b32.xlu0 %v2257_v44, %s3004_s0 }
 0x952   :  { %2324 = vrot.lane.b32.xlu1 %v2254_v45, %s3004_s0 }
 0x954   :  { %2334 = vrot.lane.b32.xlu0 %v2259_v43, %s3004_s0 }
 0x956   :  { %2328 = vrot.lane.b32.xlu1 %v2256_v56, %s3004_s0 }
 0x958   :  { %2338 = vrot.lane.b32.xlu0 %v2261_v2, %s3004_s0  ;;  %v2676_v2 = vld [vmem:[%s4322_s3 + $0x8] sm:$0xf]  ;;  %s3010_s3 = smov [#allocation6]  }
 0x95a   :  { %2336 = vrot.lane.b32.xlu1 %v2260_v12, %s3004_s0 }
 0x95c   :  { %2344 = vrot.lane.b32.xlu0 %v2264_v16, %s3004_s0 }
 0x95e   :  { %2340 = vrot.lane.b32.xlu1 %v2262_v27, %s3004_s0 }
 0x960   :  { %2348 = vrot.lane.b32.xlu0 %v2266_v5, %s3004_s0 }
 0x962   :  { %2346 = vrot.lane.b32.xlu1 %v2265_v13, %s3004_s0 }
 0x964   :  { %2274 = vperm.xlu0 %2704, %v2677_v7  }
 0x966   :  { %2350 = vrot.lane.b32.xlu1 %v2267_v62, %s3004_s0  ;;  %s2621_s0 = sshll.u32 %s3010_s3, 4  ;;  %s2622_s0 = int_to_ptr.vmem [resolvable:$true] %s2621_s0 }
 0x967   :  { %s2968_s20 = scalar_lea.vmem %s2622_s0, 512  ;;  %p2973_p9 = scmp.lt.s32.totalorder %s2622_s0, %s2622_s0 }
 0x968   :  { %p2969_p8 = scmp.ne.s32.totalorder %s2622_s0, %s2968_s20  ;;  %p2974_p10 = scmp.lt.s32.totalorder %s2968_s20, %s2968_s20 }
 0x96a   :  { %2499 = vperm.xlu1 %2785, %v2682_v17   ;;  %p2975_p11 = por %p2974_p10, %p2973_p9 }
 0x96c   :  { %p2976_p12 = pnand %p2975_p11, %p2969_p8 }
 0x99e   :  { %v2323_v27 = vpop.permute.xlu1 %2322 }
 0x9a6   :  { %v2333_v9 = vpop.permute.xlu0 %2332 }
 0x9aa   :  { %v2311_v26 = vpop.permute.xlu0 %2310 }
 0x9ac   :  { %v2343_v53 = vpop.permute.xlu1 %2342 }
 0x9ae   :  { %v2313_v34 = vpop.permute.xlu0 %2312 }
 0x9b0   :  { %v2303_v63 = vpop.permute.xlu1 %2302 }
 0x9b2   :  { %v2307_v42 = vpop.permute.xlu0 %2306 }
 0x9b4   :  { %v2321_v55 = vpop.permute.xlu1 %2320 }
 0x9b6   :  { %v2315_v20 = vpop.permute.xlu0 %2314 }
 0x9b7   :  { %v2356_v58 = vsel %vm590_vm8, %v2313_v34, %v2315_v20 }
 0x9b8   :  { %v2305_v11 = vpop.permute.xlu1 %2304 }
 0x9b9   :  { %v2352_v47 = vsel %vm590_vm8, %v2303_v63, %v2305_v11  ;;  %v2353_v24 = vsel %vm590_vm8, %v2305_v11, %v2307_v42  ;;  %v2490_v11 = vld [vmem:[#allocation3 + $0x8] sm:$0xf] }
 0x9ba   :  { %2403 = vmatprep.subr.bf16.mxu0 %v2353_v24  ;;  %v2319_v59 = vpop.permute.xlu0 %2318 }
 0x9bb   :  { %2404 = vmatpush1.bf16.msra.mxu0 %v2352_v47  ;;  %v2359_v60 = vsel %vm590_vm8, %v2319_v59, %v2321_v55 }
 0x9bc   :  { %v2309_v32 = vpop.permute.xlu1 %2308 }
 0x9bd   :  { %v2354_v52 = vsel %vm590_vm8, %v2307_v42, %v2309_v32  ;;  %v2355_v25 = vsel %vm590_vm8, %v2309_v32, %v2311_v26 }
 0x9be   :  { %2444 = vmatprep.subr.bf16.mxu1 %v2355_v25  ;;  %v2327_v6 = vpop.permute.xlu0 %2326 }
 0x9bf   :  { %2445 = vmatpush1.bf16.msra.mxu1 %v2354_v52 }
 0x9c0   :  { %2446 = vmatprep.subr.bf16.mxu1 %v2359_v60  ;;  %v2317_v48 = vpop.permute.xlu1 %2316 }
 0x9c1   :  { %v2358_v57 = vsel %vm590_vm8, %v2317_v48, %v2319_v59  ;;  %v2357_v15 = vsel %vm590_vm8, %v2315_v20, %v2317_v48 }
 0x9c2   :  { %2405 = vmatprep.subr.bf16.mxu0 %v2357_v15  ;;  %v2331_v10 = vpop.permute.xlu0 %2330 }
 0x9c3   :  { %2406 = vmatpush1.bf16.msra.mxu0 %v2356_v58  ;;  %2447 = vmatpush1.bf16.msra.mxu1 %v2358_v57 }
 0x9c4   :  { %v2325_v3 = vpop.permute.xlu1 %2324 }
 0x9c5   :  { %v2360_v51 = vsel %vm590_vm8, %v2323_v27, %v2325_v3  ;;  %v2361_v50 = vsel %vm590_vm8, %v2325_v3, %v2327_v6 }
 0x9c6   :  { %2407 = vmatprep.subr.bf16.mxu0 %v2361_v50  ;;  %v2335_v36 = vpop.permute.xlu0 %2334 }
 0x9c7   :  { %2408 = vmatpush1.bf16.msra.mxu0 %v2360_v51  ;;  %v2364_v28 = vsel %vm590_vm8, %v2333_v9, %v2335_v36 }
 0x9c8   :  { %v2329_v39 = vpop.permute.xlu1 %2328 }
 0x9c9   :  { %v2362_v44 = vsel %vm590_vm8, %v2327_v6, %v2329_v39  ;;  %v2363_v45 = vsel %vm590_vm8, %v2329_v39, %v2331_v10 }
 0x9ca   :  { %2448 = vmatprep.subr.bf16.mxu1 %v2363_v45  ;;  %v2339_v1 = vpop.permute.xlu0 %2338 }
 0x9cb   :  { %2449 = vmatpush1.bf16.msra.mxu1 %v2362_v44 }
 0x9cc   :  { %v2337_v54 = vpop.permute.xlu1 %2336 }
 0x9cd   :  { %v2365_v38 = vsel %vm590_vm8, %v2335_v36, %v2337_v54  ;;  %v2366_v56 = vsel %vm590_vm8, %v2337_v54, %v2339_v1 }
 0x9ce   :  { %2409 = vmatprep.subr.bf16.mxu0 %v2365_v38  ;;  %v2345_v46 = vpop.permute.xlu0 %2344 }
 0x9cf   :  { %2410 = vmatpush1.bf16.msra.mxu0 %v2364_v28  ;;  %v2368_v31 = vsel %vm590_vm8, %v2343_v53, %v2345_v46 }
 0x9d0   :  { %v2341_v19 = vpop.permute.xlu1 %2340  ;;  %v2392_v40 = vsel %vm87_vm0, %v2368_v31, 0 }
 0x9d1   :  { %v2367_v43 = vsel %vm590_vm8, %v2339_v1, %v2341_v19 }
 0x9d2   :  { %2450 = vmatprep.subr.bf16.mxu1 %v2367_v43  ;;  %v2349_v61 = vpop.permute.xlu0 %2348 }
 0x9d3   :  { %2451 = vmatpush1.bf16.msra.mxu1 %v2366_v56 }
 0x9d4   :  { %v2347_v8 = vpop.permute.xlu1 %2346 }
 0x9d5   :  { %v2369_v37 = vsel %vm590_vm8, %v2345_v46, %v2347_v8  ;;  %v2370_v30 = vsel %vm590_vm8, %v2347_v8, %v2349_v61 }
 0x9d6   :  { %2678 = vmatprep.subr.msk.bf16.mxu0 %vm87_vm0, %v2369_v37  ;;  %v2398_v22 = vsel %vm87_vm0, %v2370_v30, 0 }
 0x9d7   :  { %2412 = vmatpush1.bf16.msra.mxu0 %v2392_v40 }
 0x9d8   :  { %v2351_v12 = vpop.permute.xlu1 %2350 }
 0x9d9   :  { %v2371_v29 = vsel %vm590_vm8, %v2349_v61, %v2351_v12 }
 0x9da   :  { %2679 = vmatmul.mubr.msk.bf16.vlgmr.msra.gmra.mrb[32].mxu0 %vm941_vm15, %v2676_v2  ;;  %2680 = vmatprep.subr.msk.bf16.mxu1 %vm87_vm0, %v2371_v29 }
 0x9db   :  { %2453 = vmatpush1.bf16.msra.mxu1 %v2398_v22  ;;  %2549 = vmatprep.mubr.bf16.mxu0 %v4405_v18 }
 0x9de   :  { %2681 = vmatmul.mubr.msk.bf16.vlgmr.msra.gmra.mrb[32].mxu1 %vm941_vm15, %v2676_v2 }
 0x9df   :  { %2590 = vmatprep.mubr.bf16.mxu1 %v4405_v18 }
 0x9e3   :  { %v2275_v14 = vpop.permute.xlu0 %2274 }
 0x9e9   :  { %v2500_v59 = vpop.permute.xlu1 %2499 }
 0xaad   :  { %v2437_v16 = vpop.f32.mrb[32].mxu0 }
 0xaae   :  { %v2438_v0 = vadd.f32 %v2437_v16, %v2275_v14  ;;  %v2439_v21 = vpop.f32.mrb[33].mxu0 }
 0xaaf   :  { %v2440_v33 = vadd.f32 %v2439_v21, %v2275_v14  ;;  %v2441_v5 = vpop.f32.mrb[34].mxu0 }
 0xab0   :  { %v2485_v13 = vmax.f32 %v2438_v0, 0.0  ;;  %v2442_v49 = vpop.f32.mrb[35].mxu0 }
 0xab1   :  { %v2486_v7 = vmax.f32 %v2440_v33, 0.0  ;;  %v2478_v62 = vpop.f32.mrb[32].mxu1 }
 0xab2   :  { %v2491_v17 = vpack.c.bf16 %v2485_v13, %v2485_v13  ;;  %v2479_v9 = vadd.f32 %v2478_v62, %v2275_v14  ;;  %v2480_v27 = vpop.f32.mrb[33].mxu1 }
 0xab3   :  { %v2492_v26 = vpack.c.bf16 %v2486_v7, %v2486_v7  ;;  %v2481_v53 = vadd.f32 %v2480_v27, %v2275_v14  ;;  %v2482_v34 = vpop.f32.mrb[34].mxu1 }
 0xab4   :  { %v2487_v63 = vmax.f32 %v2479_v9, 0.0  ;;  %v2483_v42 = vpop.f32.mrb[35].mxu1  ;;  %v2506_v18 = vsel %vm87_vm0, %v2491_v17, 0 }
 0xab5   :  { %v2488_v55 = vmax.f32 %v2481_v53, 0.0  ;;  %2683 = vmatprep.subr.msk.bf16.mxu0 %vm87_vm0, %v2492_v26 }
 0xab6   :  { %v2493_v20 = vpack.c.bf16 %v2487_v63, %v2487_v63  ;;  %2518 = vmatpush1.bf16.msra.mxu0 %v2506_v18 }
 0xab7   :  { %v2494_v47 = vpack.c.bf16 %v2488_v55, %v2488_v55 }
 0xab8   :  { %v2512_v24 = vsel %vm87_vm0, %v2493_v20, 0 }
 0xab9   :  { %2684 = vmatmul.mubr.msk.bf16.vlgmr.msra.gmra.mrb[36].mxu0 %vm83_vm1, %v2490_v11  ;;  %2685 = vmatprep.subr.msk.bf16.mxu1 %vm87_vm0, %v2494_v47 }
 0xaba   :  { %2559 = vmatpush1.bf16.msra.mxu1 %v2512_v24 }
 0xabd   :  { %2686 = vmatmul.mubr.msk.bf16.vlgmr.msra.gmra.mrb[36].mxu1 %vm83_vm1, %v2490_v11 }
 0xb8c   :  { %v2551_v32 = vpop.f32.mrb[36].mxu0 }
 0xb8d   :  { %v2552_v52 = vadd.f32 %v2551_v32, %v2500_v59  ;;  %v2553_v25 = vpop.f32.mrb[37].mxu0 }
 0xb8e   :  { %v2554_v6 = vadd.f32 %v2553_v25, %v2500_v59  ;;  %v2555_v60 = vpop.f32.mrb[38].mxu0 }
 0xb8f   :  { %v2599_v48 = vmax.f32 %v2552_v52, 0.0  ;;  %v2556_v57 = vpop.f32.mrb[39].mxu0 }
 0xb90   :  { %v2600_v15 = vmax.f32 %v2554_v6, 0.0  ;;  %v2592_v58 = vpop.f32.mrb[36].mxu1 }
 0xb91   :  { %v2603_v10 = vadd.f32 %v2599_v48, %v3983_v23  ;;  %v2593_v3 = vadd.f32 %v2592_v58, %v2500_v59  ;;  %v2594_v51 = vpop.f32.mrb[37].mxu1 }
 0xb92   :  { %v2604_v50 = vadd.f32 %v2600_v15, %v3985_v41  ;;  %v2595_v36 = vadd.f32 %v2594_v51, %v2500_v59  ;;  %v2596_v39 = vpop.f32.mrb[38].mxu1 }
 0xb93   :  { %v2607_v44 = vmax.f32 %v2603_v10, 0.0  ;;  %v2601_v45 = vmax.f32 %v2593_v3, 0.0  ;;  %v2597_v1 = vpop.f32.mrb[39].mxu1 }
 0xb94   :  { %v2608_v54 = vmax.f32 %v2604_v50, 0.0  ;;  %v2602_v38 = vmax.f32 %v2595_v36, 0.0 }
 0xb95   :  { %2611 = vst [vmem:[#allocation6] sm:$0xff] %v2607_v44  ;;  %v2605_v28 = vadd.f32 %v2601_v45, %v3993_v35 }
 0xb96   :  { %2612 = vst [vmem:[#allocation6 + $0x8] sm:$0xff] %v2608_v54  ;;  %v2606_v46 = vadd.f32 %v2602_v38, %v3996_v4 }
 0xb97   :  { %v2609_v23 = vmax.f32 %v2605_v28, 0.0 }
 0xb98   :  { %v2610_v19 = vmax.f32 %v2606_v46, 0.0 }
 0xb99   :  { %2613 = vst [vmem:[#allocation6 + $0x10] sm:$0xff] %v2609_v23 }
 0xb9a   :  { %2614 = vst [vmem:[#allocation6 + $0x18] sm:$0xff] %v2610_v19 }
 0xb9b   :  { %2979 = shalt.err (!%p2976_p12)
}
 0xb9c   :  { %s2980_s22 = scalar_lea.hbm %s4329_s10, 512 }
 0xb9d   :  { %p2981_p13 = scmp.ne.s32.totalorder %s4329_s10, %s2980_s22  ;;  %p2984_p0 = scmp.lt.u32.totalorder %s2980_s22, %s4329_s10 }
 0xb9f   :  { %p2986_p1 = pnand %p2984_p0, %p2981_p13 }
 0xba1   :  { %2989 = shalt.err (!%p2986_p1)
}
 0xba2   :  { %2624 = dma.vmem_to_hbm [thread:$0]  %s2622_s0, 512, %s4329_s10, [#allocation5]  }
 0xba3   :  { %2992 = dma.done.wait [#allocation5], 512  }
 0xba4   :  { %2993 = vsyncadd [#allocation5], 4294966784 }
 0xba5   :  { %2628 = vsyncpa [#allocation4], 1 }
 0xba6   :  { %2629 = vsyncpa [#allocation5], 1 }

</bundles_post_ra>
